<compile_context>
chip_gen: v7x
topology: tpu7x:2x2x1
jax: 0.10.0
libtpu: 0.0.40
codegen_flags: <defaults>
</compile_context>

<pallas_src>
import jax
import jax.numpy as jnp
from jax import lax
from jax.experimental import pallas as pl
from jax.experimental.pallas import tpu as pltpu

PAD = 3                      # max half-kernel (k=7 -> padding 3); guard width per side
DOT_DTYPE = jnp.bfloat16     # MXU operand dtype (f32 accumulation); jnp.float32 for exactness


# ----------------------------------------------------------------------------
# Kernel factory: one grid step = one batch tile through ALL residual blocks.
# ----------------------------------------------------------------------------
def _make_kernel(block_cfgs, Bt, L):
    """block_cfgs: tuple of (cin, cout, expand) per block (all static)."""
    LP = L + 2 * PAD                 # padded segment length
    W = Bt * LP                      # logical (lane) width processed per grid step
    WPAD = W + 2 * PAD               # physical scratch width (margins keep tap slices in-bounds)
    n_blk = len(block_cfgs)
    n_w = 3 * n_blk                  # conv7(/fused-expansion), conv5, conv3 weights per block

    def kernel(*refs):
        x_ref, mask_ref, bn_ref = refs[0], refs[1], refs[2]
        w_refs = refs[3:3 + n_w]
        o_ref = refs[3 + n_w]
        a_ref, b_ref, im_ref = refs[4 + n_w:7 + n_w]

        mask = mask_ref[...]                                   # (1, W): 1 on segment interiors

        # Zero ONLY the PAD-wide physical margins once per grid step (finite padding for the
        # masked guard-column outputs).  Interiors are fully overwritten by masked writes.
        zmarg = jnp.zeros((a_ref.shape[0], PAD), jnp.float32)
        a_ref[:, 0:PAD] = zmarg
        a_ref[:, PAD + W:WPAD] = zmarg
        b_ref[:, 0:PAD] = zmarg
        b_ref[:, PAD + W:WPAD] = zmarg

        def im2col(src_ref, ci, k, p):
            # Stack the k shifted (ci, W) slices into the bf16 im2col scratch (tap-major).
            for t in range(k):
                im_ref[t * ci:(t + 1) * ci, :] = (
                    src_ref[0:ci, PAD + t - p:PAD + t - p + W].astype(im_ref.dtype))
            return im_ref[0:k * ci, :]

        def bias(bi, j, cout):
            # packed per-channel BN table: column 5*bi+j, channels on sublanes -> (cout, 1)
            return bn_ref[0:cout, 5 * bi + j:5 * bi + j + 1]

        for bi, (cin, cout, expand) in enumerate(block_cfgs):
            w7_ref, w5_ref, w3_ref = w_refs[3 * bi], w_refs[3 * bi + 1], w_refs[3 * bi + 2]
            src_ref = x_ref if bi == 0 else a_ref
            last = bi == n_blk - 1

            # conv7 (+ fused 1x1 expansion conv for expand blocks): ONE MXU matmul.
            y = jnp.dot(w7_ref[...], im2col(src_ref, cin, 7, 3),
                        preferred_element_type=jnp.float32)
            if expand:
                h = jnp.maximum(y[0:cout] + bias(bi, 0, cout), 0.0)
                # residual path (BN scale already folded into the weights): park in a_ref,
                # whose contents are no longer needed for this block.
                a_ref[0:cout, PAD:PAD + W] = y[cout:2 * cout] + bias(bi, 3, cout)
            else:
                h = jnp.maximum(y + bias(bi, 0, cout), 0.0)
            b_ref[0:cout, PAD:PAD + W] = h * mask              # masked -> guards stay zero

            # conv5 -> bias -> relu
            h = jnp.maximum(
                jnp.dot(w5_ref[...], im2col(b_ref, cout, 5, 2),
                        preferred_element_type=jnp.float32) + bias(bi, 1, cout), 0.0)
            b_ref[0:cout, PAD:PAD + W] = h * mask

            # conv3 -> bias -> relu
            h3 = jnp.maximum(
                jnp.dot(w3_ref[...], im2col(b_ref, cout, 3, 1),
                        preferred_element_type=jnp.float32) + bias(bi, 2, cout), 0.0)

            # residual add + relu
            if expand:
                res = a_ref[0:cout, PAD:PAD + W]
            else:                                              # identity path: scale+bias lazily
                res = src_ref[0:cout, PAD:PAD + W] * bias(bi, 4, cout) + bias(bi, 3, cout)
            out = jnp.maximum(h3 + res, 0.0)
            if last:
                o_ref[...] = out.astype(o_ref.dtype)           # dense packed output slab
            else:
                a_ref[0:cout, PAD:PAD + W] = out * mask        # next block's input

    return kernel


# ----------------------------------------------------------------------------
# Wrapper: one pallas_call for the whole ResNet1D forward pass.
# ----------------------------------------------------------------------------
def resnet1d_forward(x, block_params):
    """x: (B, Cin, L) float32; block_params: list of dicts (see init_block_params)."""
    B, cin0, L = x.shape
    LP = L + 2 * PAD

    # ---- fold BN (inference) scale into conv weights (f32 fold, then bf16); pack biases ----
    flat_w, block_cfgs, bn_rows = [], [], []
    cin, c_max = cin0, cin0
    for p in block_params:
        cout = p["w7"].shape[0]
        expand = cin != cout
        block_cfgs.append((cin, cout, expand))
        c_max = max(c_max, cin, cout)

        scale = p["bn_scale"].astype(jnp.float32)      # (4, cout): bn7, bn5, bn3, bn_residual
        bb = p["bn_bias"].astype(jnp.float32)

        def fold(wt, s):                               # (Cout,Cin,K) -> (Cout, K*Cin), tap-major
            co, ci, k = wt.shape
            wf = wt.astype(jnp.float32) * s[:, None, None]
            return jnp.transpose(wf, (0, 2, 1)).reshape(co, k * ci)

        w7 = fold(p["w7"], scale[0])
        if expand:
            # Fuse the folded 1x1 expansion conv into the conv7 matmul: place it in the
            # centre-tap (t=3) columns and stack below w7 -> (2*Cout, 7*Cin).
            wexp = (p["wexp"].astype(jnp.float32) * scale[3][:, None, None])[:, :, 0]
            wexp_row = jnp.zeros((cout, 7, cin), jnp.float32).at[:, 3, :].set(wexp)
            w7 = jnp.concatenate([w7, wexp_row.reshape(cout, 7 * cin)], axis=0)
        flat_w += [w7.astype(DOT_DTYPE),
                   fold(p["w5"], scale[1]).astype(DOT_DTYPE),
                   fold(p["w3"], scale[2]).astype(DOT_DTYPE)]
        bn_rows.append((bb, scale, cout))
        cin = cout
    c_last = block_cfgs[-1][1]
    n_blk = len(block_cfgs)

    # One packed per-channel table: columns [bias7, bias5, bias3, bias_res, scale_res] / block.
    bn_pack = jnp.zeros((c_max, 5 * n_blk), jnp.float32)
    for bi, (bb, scale, cout) in enumerate(bn_rows):
        cols = jnp.stack([bb[0], bb[1], bb[2], bb[3], scale[3]], axis=1)     # (cout, 5)
        bn_pack = bn_pack.at[0:cout, 5 * bi:5 * bi + 5].set(cols)

    # ---- batch-tile selection under an explicit VMEM budget (fits v7x's 64 MiB) ----
    w_bytes = sum(int(w.size) * w.dtype.itemsize for w in flat_w)

    def vmem_needed(bt):
        w_ = bt * LP
        wp = w_ + 2 * PAD
        scratch = 2 * c_max * wp * 4 + 7 * c_max * w_ * 2            # f32 acts + bf16 im2col
        io = (cin0 * wp * 4 + w_ * 4 + int(bn_pack.size) * 4 + w_bytes + c_last * w_ * 4)
        return scratch + 2 * io + (2 << 20)                          # 2x: default double-buffer

    budget = 48 << 20
    divisors = [d for d in range(1, B + 1) if B % d == 0]
    num_tiles = next((nt for nt in divisors if vmem_needed(B // nt) <= budget), B)
    for nt in divisors:            # deepen the grid (megacore + pipelining) while lane-dense
        if (nt > num_tiles and nt <= 8
                and (B // nt) * LP >= 128 and vmem_needed(B // nt) <= budget):
            num_tiles = nt
    Bt = B // num_tiles
    W = Bt * LP
    WPAD = W + 2 * PAD
    # TODO(synk): pad B to an even tile count on v7x so both TensorCores are always fed.

    # ---- wrapper-side pack: lane-dense guarded layout (num_tiles, cin0, WPAD) ----
    xp = jnp.pad(x, ((0, 0), (0, 0), (PAD, PAD)))                    # zero segment guards
    xp = xp.reshape(num_tiles, Bt, cin0, LP).transpose(0, 2, 1, 3).reshape(num_tiles, cin0, W)
    xp = jnp.pad(xp, ((0, 0), (0, 0), (PAD, PAD)))                   # zero physical margins

    seg = jnp.concatenate([jnp.zeros((1, PAD), jnp.float32),
                           jnp.ones((1, L), jnp.float32),
                           jnp.zeros((1, PAD), jnp.float32)], axis=1)
    mask = jnp.tile(seg, (1, Bt))                                    # (1, W) interior mask

    in_specs = [pl.BlockSpec((None, cin0, WPAD), lambda g: (g, 0, 0)),   # packed input tile
                pl.BlockSpec((1, W), lambda g: (0, 0)),                  # interior mask
                pl.BlockSpec(bn_pack.shape, lambda g: (0, 0))]           # packed BN table
    for w in flat_w:
        in_specs.append(pl.BlockSpec(w.shape, lambda g: (0, 0)))
    # TODO(synk): grid-invariant weights could be single-buffered (pl.Buffered(1)) for a
    # little extra VMEM headroom; kept default-buffered for portability.

    kernel = _make_kernel(tuple(block_cfgs), Bt, L)

    packed_out = pl.pallas_call(
        kernel,
        out_shape=jax.ShapeDtypeStruct((num_tiles, c_last, W), x.dtype),
        grid=(num_tiles,),
        in_specs=in_specs,
        out_specs=pl.BlockSpec((None, c_last, W), lambda g: (g, 0, 0)),
        scratch_shapes=[
            pltpu.VMEM((c_max, WPAD), jnp.float32),      # activation A (block in/out, residual)
            pltpu.VMEM((c_max, WPAD), jnp.float32),      # activation B (intra-block)
            pltpu.VMEM((7 * c_max, W), DOT_DTYPE),       # bf16 im2col stack
        ],
        compiler_params=pltpu.CompilerParams(
            dimension_semantics=("parallel",),
            vmem_limit_bytes=int(min(max(vmem_needed(Bt), 32 << 20), 112 << 20))),
    )(xp, mask, bn_pack, *flat_w)

    # ---- wrapper-side unpack: (num_tiles, c_last, W) -> (B, c_last, L) ----
    y = packed_out.reshape(num_tiles, c_last, Bt, LP).transpose(0, 2, 1, 3)
    return y.reshape(B, c_last, LP)[:, :, PAD:PAD + L]


# ----------------------------------------------------------------------------
# Deterministic parameter initialization (matches PyTorch module shapes).
# ----------------------------------------------------------------------------
def init_block_params(key, cin, cout):
    ks = jax.random.split(key, 8)

    def w(k, co, ci, ksz):
        return (jax.random.normal(k, (co, ci, ksz), jnp.float32)
                / jnp.sqrt(jnp.float32(ci * ksz)))

    eps = 1e-5
    gamma = 1.0 + 0.1 * jax.random.normal(ks[4], (4, cout), jnp.float32)
    beta = 0.1 * jax.random.normal(ks[5], (4, cout), jnp.float32)
    mean = 0.1 * jax.random.normal(ks[6], (4, cout), jnp.float32)
    var = 1.0 + 0.1 * jax.random.uniform(ks[7], (4, cout), jnp.float32)
    scale = gamma / jnp.sqrt(var + eps)
    bias = beta - mean * scale
    return {
        "w7": w(ks[0], cout, cin, 7),      # Conv1d(cin,  cout, k=7, p=3, bias=False)
        "w5": w(ks[1], cout, cout, 5),     # Conv1d(cout, cout, k=5, p=2, bias=False)
        "w3": w(ks[2], cout, cout, 3),     # Conv1d(cout, cout, k=3, p=1, bias=False)
        "wexp": w(ks[3], cout, cin, 1),    # Conv1d(cin,  cout, k=1, p=0, bias=False)
        "bn_scale": scale.astype(jnp.float32),  # rows: bn7, bn5, bn3, bn(residual)
        "bn_bias": bias.astype(jnp.float32),
    }


# ----------------------------------------------------------------------------
# Pure-JAX reference (same semantics) for the correctness check.
# ----------------------------------------------------------------------------
def _block_ref(x, p):
    cin = x.shape[1]
    cout = p["w7"].shape[0]

    def conv(h, w, pad):
        return lax.conv_general_dilated(h, w, (1,), [(pad, pad)],
                                        dimension_numbers=("NCH", "OIH", "NCH"))

    def bn(h, i):
        return h * p["bn_scale"][i][None, :, None] + p["bn_bias"][i][None, :, None]

    h = jax.nn.relu(bn(conv(x, p["w7"], 3), 0))
    h = jax.nn.relu(bn(conv(h, p["w5"], 2), 1))
    h = jax.nn.relu(bn(conv(h, p["w3"], 1), 2))
    res = conv(x, p["wexp"], 0) if cin != cout else x
    res = bn(res, 3)
    return jax.nn.relu(h + res)


def _ref_forward(x, block_params):
    for p in block_params:
        x = _block_ref(x, p)
    return x


if __name__ == "__main__":
    # Small config consistent with ResNet1D(n_chs, n_out, n_blks):
    #   n_chs=4 -> N_FILTS = 4 * 4 = 16, n_blks=2, input (B=2, C=4, L=16)
    N_CHS, N_BLKS = 4, 2
    N_FILTS = N_CHS * 4
    B, L = 2, 16

    key = jax.random.PRNGKey(0)
    kx, kp = jax.random.split(key)
    x = jax.random.normal(kx, (B, N_CHS, L), jnp.float32)

    chan_plan = [(N_CHS, N_FILTS)] + [(N_FILTS, N_FILTS)] * (N_BLKS - 1)
    pkeys = jax.random.split(kp, len(chan_plan))
    block_params = [init_block_params(k, ci, co)
                    for k, (ci, co) in zip(pkeys, chan_plan)]

    out = jax.block_until_ready(jax.jit(resnet1d_forward)(x, block_params))
    ref = jax.block_until_ready(_ref_forward(x, block_params))

    assert out.shape == (B, N_FILTS, L), out.shape
    # bf16 MXU operands (f32 accumulation) -> allow a small relative-to-max tolerance.
    err = float(jnp.max(jnp.abs(out - ref)))
    tol = 5e-2 * float(jnp.maximum(1.0, jnp.max(jnp.abs(ref))))
    assert err <= tol, (err, tol)
    print("KERNEL_OK")
</pallas_src>

<mosaic_0001>
module attributes {stable_mosaic.version = 11 : i64} {
  func.func @kernel(%arg0: i32, %arg1: memref<1x4x50xf32, #tpu.memory_space<vmem>>, %arg2: memref<1x44xf32, #tpu.memory_space<vmem>>, %arg3: memref<16x10xf32, #tpu.memory_space<vmem>>, %arg4: memref<32x28xbf16, #tpu.memory_space<vmem>>, %arg5: memref<16x80xbf16, #tpu.memory_space<vmem>>, %arg6: memref<16x48xbf16, #tpu.memory_space<vmem>>, %arg7: memref<16x112xbf16, #tpu.memory_space<vmem>>, %arg8: memref<16x80xbf16, #tpu.memory_space<vmem>>, %arg9: memref<16x48xbf16, #tpu.memory_space<vmem>>, %arg10: memref<1x16x44xf32, #tpu.memory_space<vmem>>, %arg11: memref<16x50xf32, #tpu.memory_space<vmem>>, %arg12: memref<16x50xf32, #tpu.memory_space<vmem>>, %arg13: memref<112x44xbf16, #tpu.memory_space<vmem>>) attributes {dimension_semantics = [#tpu.dimension_semantics<parallel>], iteration_bounds = array<i64: 1>, scalar_prefetch = 0 : i64, scratch_operands = 3 : i64, tpu.core_type = #tpu.core_type<tc>, window_params = [{transform_indices = @transform_0, window_bounds = array<i64: 1, 4, 50>}, {pipeline_mode = #tpu.pipeline_mode<synchronous>, transform_indices = @transform_1, window_bounds = array<i64: 1, 44>}, {pipeline_mode = #tpu.pipeline_mode<synchronous>, transform_indices = @transform_2, window_bounds = array<i64: 16, 10>}, {pipeline_mode = #tpu.pipeline_mode<synchronous>, transform_indices = @transform_3, window_bounds = array<i64: 32, 28>}, {pipeline_mode = #tpu.pipeline_mode<synchronous>, transform_indices = @transform_4, window_bounds = array<i64: 16, 80>}, {pipeline_mode = #tpu.pipeline_mode<synchronous>, transform_indices = @transform_5, window_bounds = array<i64: 16, 48>}, {pipeline_mode = #tpu.pipeline_mode<synchronous>, transform_indices = @transform_6, window_bounds = array<i64: 16, 112>}, {pipeline_mode = #tpu.pipeline_mode<synchronous>, transform_indices = @transform_7, window_bounds = array<i64: 16, 80>}, {pipeline_mode = #tpu.pipeline_mode<synchronous>, transform_indices = @transform_8, window_bounds = array<i64: 16, 48>}, {transform_indices = @transform_9, window_bounds = array<i64: 1, 16, 44>}]} {
    %c0 = arith.constant 0 : index
    %c0_0 = arith.constant 0 : index
    %0 = vector.load %arg2[%c0, %c0_0] : memref<1x44xf32, #tpu.memory_space<vmem>>, vector<1x44xf32>
    %cst = arith.constant 0.000000e+00 : f32
    %1 = vector.broadcast %cst : f32 to vector<16x3xf32>
    %c0_1 = arith.constant 0 : index
    %c0_2 = arith.constant 0 : index
    %2 = vector.load %arg11[%c0_1, %c0_2] : memref<16x50xf32, #tpu.memory_space<vmem>>, vector<16x3xf32>
    tpu.vector_store %arg11[%c0_1, %c0_2], %1 {strides = array<i32>} : memref<16x50xf32, #tpu.memory_space<vmem>>, vector<16x3xf32>,
    %c0_3 = arith.constant 0 : index
    %c47 = arith.constant 47 : index
    %3 = vector.load %arg11[%c0_3, %c47] : memref<16x50xf32, #tpu.memory_space<vmem>>, vector<16x3xf32>
    tpu.vector_store %arg11[%c0_3, %c47], %1 {strides = array<i32>} : memref<16x50xf32, #tpu.memory_space<vmem>>, vector<16x3xf32>,
    %c0_4 = arith.constant 0 : index
    %c0_5 = arith.constant 0 : index
    %4 = vector.load %arg12[%c0_4, %c0_5] : memref<16x50xf32, #tpu.memory_space<vmem>>, vector<16x3xf32>
    tpu.vector_store %arg12[%c0_4, %c0_5], %1 {strides = array<i32>} : memref<16x50xf32, #tpu.memory_space<vmem>>, vector<16x3xf32>,
    %c0_6 = arith.constant 0 : index
    %c47_7 = arith.constant 47 : index
    %5 = vector.load %arg12[%c0_6, %c47_7] : memref<16x50xf32, #tpu.memory_space<vmem>>, vector<16x3xf32>
    tpu.vector_store %arg12[%c0_6, %c47_7], %1 {strides = array<i32>} : memref<16x50xf32, #tpu.memory_space<vmem>>, vector<16x3xf32>,
    %c0_8 = arith.constant 0 : index
    %c0_9 = arith.constant 0 : index
    %6 = vector.load %arg4[%c0_8, %c0_9] : memref<32x28xbf16, #tpu.memory_space<vmem>>, vector<32x28xbf16>
    %c0_10 = arith.constant 0 : index
    %c0_11 = arith.constant 0 : index
    %c0_12 = arith.constant 0 : index
    %7 = vector.load %arg1[%c0_10, %c0_11, %c0_12] : memref<1x4x50xf32, #tpu.memory_space<vmem>>, vector<1x4x44xf32>
    %8 = vector.shape_cast %7 : vector<1x4x44xf32> to vector<4x44xf32>
    %9 = arith.truncf %8 : vector<4x44xf32> to vector<4x44xbf16>
    %c0_13 = arith.constant 0 : index
    %c0_14 = arith.constant 0 : index
    %10 = vector.load %arg13[%c0_13, %c0_14] : memref<112x44xbf16, #tpu.memory_space<vmem>>, vector<4x44xbf16>
    tpu.vector_store %arg13[%c0_13, %c0_14], %9 {strides = array<i32>} : memref<112x44xbf16, #tpu.memory_space<vmem>>, vector<4x44xbf16>,
    %c0_15 = arith.constant 0 : index
    %c0_16 = arith.constant 0 : index
    %c1 = arith.constant 1 : index
    %11 = vector.load %arg1[%c0_15, %c0_16, %c1] : memref<1x4x50xf32, #tpu.memory_space<vmem>>, vector<1x4x44xf32>
    %12 = vector.shape_cast %11 : vector<1x4x44xf32> to vector<4x44xf32>
    %13 = arith.truncf %12 : vector<4x44xf32> to vector<4x44xbf16>
    %c4 = arith.constant 4 : index
    %c0_17 = arith.constant 0 : index
    %14 = vector.load %arg13[%c4, %c0_17] : memref<112x44xbf16, #tpu.memory_space<vmem>>, vector<4x44xbf16>
    tpu.vector_store %arg13[%c4, %c0_17], %13 {strides = array<i32>} : memref<112x44xbf16, #tpu.memory_space<vmem>>, vector<4x44xbf16>,
    %c0_18 = arith.constant 0 : index
    %c0_19 = arith.constant 0 : index
    %c2 = arith.constant 2 : index
    %15 = vector.load %arg1[%c0_18, %c0_19, %c2] : memref<1x4x50xf32, #tpu.memory_space<vmem>>, vector<1x4x44xf32>
    %16 = vector.shape_cast %15 : vector<1x4x44xf32> to vector<4x44xf32>
    %17 = arith.truncf %16 : vector<4x44xf32> to vector<4x44xbf16>
    %c8 = arith.constant 8 : index
    %c0_20 = arith.constant 0 : index
    %18 = vector.load %arg13[%c8, %c0_20] : memref<112x44xbf16, #tpu.memory_space<vmem>>, vector<4x44xbf16>
    tpu.vector_store %arg13[%c8, %c0_20], %17 {strides = array<i32>} : memref<112x44xbf16, #tpu.memory_space<vmem>>, vector<4x44xbf16>,
    %c0_21 = arith.constant 0 : index
    %c0_22 = arith.constant 0 : index
    %c3 = arith.constant 3 : index
    %19 = vector.load %arg1[%c0_21, %c0_22, %c3] : memref<1x4x50xf32, #tpu.memory_space<vmem>>, vector<1x4x44xf32>
    %20 = vector.shape_cast %19 : vector<1x4x44xf32> to vector<4x44xf32>
    %21 = arith.truncf %20 : vector<4x44xf32> to vector<4x44xbf16>
    %c12 = arith.constant 12 : index
    %c0_23 = arith.constant 0 : index
    %22 = vector.load %arg13[%c12, %c0_23] : memref<112x44xbf16, #tpu.memory_space<vmem>>, vector<4x44xbf16>
    tpu.vector_store %arg13[%c12, %c0_23], %21 {strides = array<i32>} : memref<112x44xbf16, #tpu.memory_space<vmem>>, vector<4x44xbf16>,
    %c0_24 = arith.constant 0 : index
    %c0_25 = arith.constant 0 : index
    %c4_26 = arith.constant 4 : index
    %23 = vector.load %arg1[%c0_24, %c0_25, %c4_26] : memref<1x4x50xf32, #tpu.memory_space<vmem>>, vector<1x4x44xf32>
    %24 = vector.shape_cast %23 : vector<1x4x44xf32> to vector<4x44xf32>
    %25 = arith.truncf %24 : vector<4x44xf32> to vector<4x44xbf16>
    %c16 = arith.constant 16 : index
    %c0_27 = arith.constant 0 : index
    %26 = vector.load %arg13[%c16, %c0_27] : memref<112x44xbf16, #tpu.memory_space<vmem>>, vector<4x44xbf16>
    tpu.vector_store %arg13[%c16, %c0_27], %25 {strides = array<i32>} : memref<112x44xbf16, #tpu.memory_space<vmem>>, vector<4x44xbf16>,
    %c0_28 = arith.constant 0 : index
    %c0_29 = arith.constant 0 : index
    %c5 = arith.constant 5 : index
    %27 = vector.load %arg1[%c0_28, %c0_29, %c5] : memref<1x4x50xf32, #tpu.memory_space<vmem>>, vector<1x4x44xf32>
    %28 = vector.shape_cast %27 : vector<1x4x44xf32> to vector<4x44xf32>
    %29 = arith.truncf %28 : vector<4x44xf32> to vector<4x44xbf16>
    %c20 = arith.constant 20 : index
    %c0_30 = arith.constant 0 : index
    %30 = vector.load %arg13[%c20, %c0_30] : memref<112x44xbf16, #tpu.memory_space<vmem>>, vector<4x44xbf16>
    tpu.vector_store %arg13[%c20, %c0_30], %29 {strides = array<i32>} : memref<112x44xbf16, #tpu.memory_space<vmem>>, vector<4x44xbf16>,
    %c0_31 = arith.constant 0 : index
    %c0_32 = arith.constant 0 : index
    %c6 = arith.constant 6 : index
    %31 = vector.load %arg1[%c0_31, %c0_32, %c6] : memref<1x4x50xf32, #tpu.memory_space<vmem>>, vector<1x4x44xf32>
    %32 = vector.shape_cast %31 : vector<1x4x44xf32> to vector<4x44xf32>
    %33 = arith.truncf %32 : vector<4x44xf32> to vector<4x44xbf16>
    %c24 = arith.constant 24 : index
    %c0_33 = arith.constant 0 : index
    %34 = vector.load %arg13[%c24, %c0_33] : memref<112x44xbf16, #tpu.memory_space<vmem>>, vector<4x44xbf16>
    tpu.vector_store %arg13[%c24, %c0_33], %33 {strides = array<i32>} : memref<112x44xbf16, #tpu.memory_space<vmem>>, vector<4x44xbf16>,
    %c0_34 = arith.constant 0 : index
    %c0_35 = arith.constant 0 : index
    %35 = vector.load %arg13[%c0_34, %c0_35] : memref<112x44xbf16, #tpu.memory_space<vmem>>, vector<28x44xbf16>
    %cst_36 = arith.constant dense<0.000000e+00> : vector<32x44xf32>
    %36 = tpu.matmul %6, %35, %cst_36 {dimension_numbers = #tpu.dot_dimension_numbers<[1], [0], [0], [1], [0, 0, 1, 1], [], []>} : vector<32x28xbf16>, vector<28x44xbf16>, vector<32x44xf32> -> vector<32x44xf32>
    %37 = vector.extract_strided_slice %36 {offsets = [0, 0], sizes = [16, 44], strides = [1, 1]} : vector<32x44xf32> to vector<16x44xf32>
    %c0_37 = arith.constant 0 : index
    %c0_38 = arith.constant 0 : index
    %38 = vector.load %arg3[%c0_37, %c0_38] : memref<16x10xf32, #tpu.memory_space<vmem>>, vector<16x1xf32>
    %39 = vector.broadcast %38 : vector<16x1xf32> to vector<16x44xf32>
    %40 = arith.addf %37, %39 : vector<16x44xf32>
    %cst_39 = arith.constant 0.000000e+00 : f32
    %41 = vector.broadcast %cst_39 : f32 to vector<16x44xf32>
    %42 = arith.maximumf %40, %41 : vector<16x44xf32>
    %43 = vector.extract_strided_slice %36 {offsets = [16, 0], sizes = [16, 44], strides = [1, 1]} : vector<32x44xf32> to vector<16x44xf32>
    %c0_40 = arith.constant 0 : index
    %c3_41 = arith.constant 3 : index
    %44 = vector.load %arg3[%c0_40, %c3_41] : memref<16x10xf32, #tpu.memory_space<vmem>>, vector<16x1xf32>
    %45 = vector.broadcast %44 : vector<16x1xf32> to vector<16x44xf32>
    %46 = arith.addf %43, %45 : vector<16x44xf32>
    %c0_42 = arith.constant 0 : index
    %c3_43 = arith.constant 3 : index
    %47 = vector.load %arg11[%c0_42, %c3_43] : memref<16x50xf32, #tpu.memory_space<vmem>>, vector<16x44xf32>
    tpu.vector_store %arg11[%c0_42, %c3_43], %46 {strides = array<i32>} : memref<16x50xf32, #tpu.memory_space<vmem>>, vector<16x44xf32>,
    %48 = vector.broadcast %0 : vector<1x44xf32> to vector<16x44xf32>
    %49 = arith.mulf %42, %48 : vector<16x44xf32>
    %c0_44 = arith.constant 0 : index
    %c3_45 = arith.constant 3 : index
    %50 = vector.load %arg12[%c0_44, %c3_45] : memref<16x50xf32, #tpu.memory_space<vmem>>, vector<16x44xf32>
    tpu.vector_store %arg12[%c0_44, %c3_45], %49 {strides = array<i32>} : memref<16x50xf32, #tpu.memory_space<vmem>>, vector<16x44xf32>,
    %c0_46 = arith.constant 0 : index
    %c0_47 = arith.constant 0 : index
    %51 = vector.load %arg5[%c0_46, %c0_47] : memref<16x80xbf16, #tpu.memory_space<vmem>>, vector<16x80xbf16>
    %c0_48 = arith.constant 0 : index
    %c1_49 = arith.constant 1 : index
    %52 = vector.load %arg12[%c0_48, %c1_49] : memref<16x50xf32, #tpu.memory_space<vmem>>, vector<16x44xf32>
    %53 = arith.truncf %52 : vector<16x44xf32> to vector<16x44xbf16>
    %c0_50 = arith.constant 0 : index
    %c0_51 = arith.constant 0 : index
    %54 = vector.load %arg13[%c0_50, %c0_51] : memref<112x44xbf16, #tpu.memory_space<vmem>>, vector<16x44xbf16>
    tpu.vector_store %arg13[%c0_50, %c0_51], %53 {strides = array<i32>} : memref<112x44xbf16, #tpu.memory_space<vmem>>, vector<16x44xbf16>,
    %c0_52 = arith.constant 0 : index
    %c2_53 = arith.constant 2 : index
    %55 = vector.load %arg12[%c0_52, %c2_53] : memref<16x50xf32, #tpu.memory_space<vmem>>, vector<16x44xf32>
    %56 = arith.truncf %55 : vector<16x44xf32> to vector<16x44xbf16>
    %c16_54 = arith.constant 16 : index
    %c0_55 = arith.constant 0 : index
    %57 = vector.load %arg13[%c16_54, %c0_55] : memref<112x44xbf16, #tpu.memory_space<vmem>>, vector<16x44xbf16>
    tpu.vector_store %arg13[%c16_54, %c0_55], %56 {strides = array<i32>} : memref<112x44xbf16, #tpu.memory_space<vmem>>, vector<16x44xbf16>,
    %c0_56 = arith.constant 0 : index
    %c3_57 = arith.constant 3 : index
    %58 = vector.load %arg12[%c0_56, %c3_57] : memref<16x50xf32, #tpu.memory_space<vmem>>, vector<16x44xf32>
    %59 = arith.truncf %58 : vector<16x44xf32> to vector<16x44xbf16>
    %c32 = arith.constant 32 : index
    %c0_58 = arith.constant 0 : index
    %60 = vector.load %arg13[%c32, %c0_58] : memref<112x44xbf16, #tpu.memory_space<vmem>>, vector<16x44xbf16>
    tpu.vector_store %arg13[%c32, %c0_58], %59 {strides = array<i32>} : memref<112x44xbf16, #tpu.memory_space<vmem>>, vector<16x44xbf16>,
    %c0_59 = arith.constant 0 : index
    %c4_60 = arith.constant 4 : index
    %61 = vector.load %arg12[%c0_59, %c4_60] : memref<16x50xf32, #tpu.memory_space<vmem>>, vector<16x44xf32>
    %62 = arith.truncf %61 : vector<16x44xf32> to vector<16x44xbf16>
    %c48 = arith.constant 48 : index
    %c0_61 = arith.constant 0 : index
    %63 = vector.load %arg13[%c48, %c0_61] : memref<112x44xbf16, #tpu.memory_space<vmem>>, vector<16x44xbf16>
    tpu.vector_store %arg13[%c48, %c0_61], %62 {strides = array<i32>} : memref<112x44xbf16, #tpu.memory_space<vmem>>, vector<16x44xbf16>,
    %c0_62 = arith.constant 0 : index
    %c5_63 = arith.constant 5 : index
    %64 = vector.load %arg12[%c0_62, %c5_63] : memref<16x50xf32, #tpu.memory_space<vmem>>, vector<16x44xf32>
    %65 = arith.truncf %64 : vector<16x44xf32> to vector<16x44xbf16>
    %c64 = arith.constant 64 : index
    %c0_64 = arith.constant 0 : index
    %66 = vector.load %arg13[%c64, %c0_64] : memref<112x44xbf16, #tpu.memory_space<vmem>>, vector<16x44xbf16>
    tpu.vector_store %arg13[%c64, %c0_64], %65 {strides = array<i32>} : memref<112x44xbf16, #tpu.memory_space<vmem>>, vector<16x44xbf16>,
    %c0_65 = arith.constant 0 : index
    %c0_66 = arith.constant 0 : index
    %67 = vector.load %arg13[%c0_65, %c0_66] : memref<112x44xbf16, #tpu.memory_space<vmem>>, vector<80x44xbf16>
    %cst_67 = arith.constant dense<0.000000e+00> : vector<16x44xf32>
    %68 = tpu.matmul %51, %67, %cst_67 {dimension_numbers = #tpu.dot_dimension_numbers<[1], [0], [0], [1], [0, 0, 1, 1], [], []>} : vector<16x80xbf16>, vector<80x44xbf16>, vector<16x44xf32> -> vector<16x44xf32>
    %c0_68 = arith.constant 0 : index
    %c1_69 = arith.constant 1 : index
    %69 = vector.load %arg3[%c0_68, %c1_69] : memref<16x10xf32, #tpu.memory_space<vmem>>, vector<16x1xf32>
    %70 = vector.broadcast %69 : vector<16x1xf32> to vector<16x44xf32>
    %71 = arith.addf %68, %70 : vector<16x44xf32>
    %cst_70 = arith.constant 0.000000e+00 : f32
    %72 = vector.broadcast %cst_70 : f32 to vector<16x44xf32>
    %73 = arith.maximumf %71, %72 : vector<16x44xf32>
    %74 = vector.broadcast %0 : vector<1x44xf32> to vector<16x44xf32>
    %75 = arith.mulf %73, %74 : vector<16x44xf32>
    %c0_71 = arith.constant 0 : index
    %c3_72 = arith.constant 3 : index
    %76 = vector.load %arg12[%c0_71, %c3_72] : memref<16x50xf32, #tpu.memory_space<vmem>>, vector<16x44xf32>
    tpu.vector_store %arg12[%c0_71, %c3_72], %75 {strides = array<i32>} : memref<16x50xf32, #tpu.memory_space<vmem>>, vector<16x44xf32>,
    %c0_73 = arith.constant 0 : index
    %c0_74 = arith.constant 0 : index
    %77 = vector.load %arg6[%c0_73, %c0_74] : memref<16x48xbf16, #tpu.memory_space<vmem>>, vector<16x48xbf16>
    %c0_75 = arith.constant 0 : index
    %c2_76 = arith.constant 2 : index
    %78 = vector.load %arg12[%c0_75, %c2_76] : memref<16x50xf32, #tpu.memory_space<vmem>>, vector<16x44xf32>
    %79 = arith.truncf %78 : vector<16x44xf32> to vector<16x44xbf16>
    %c0_77 = arith.constant 0 : index
    %c0_78 = arith.constant 0 : index
    %80 = vector.load %arg13[%c0_77, %c0_78] : memref<112x44xbf16, #tpu.memory_space<vmem>>, vector<16x44xbf16>
    tpu.vector_store %arg13[%c0_77, %c0_78], %79 {strides = array<i32>} : memref<112x44xbf16, #tpu.memory_space<vmem>>, vector<16x44xbf16>,
    %c0_79 = arith.constant 0 : index
    %c3_80 = arith.constant 3 : index
    %81 = vector.load %arg12[%c0_79, %c3_80] : memref<16x50xf32, #tpu.memory_space<vmem>>, vector<16x44xf32>
    %82 = arith.truncf %81 : vector<16x44xf32> to vector<16x44xbf16>
    %c16_81 = arith.constant 16 : index
    %c0_82 = arith.constant 0 : index
    %83 = vector.load %arg13[%c16_81, %c0_82] : memref<112x44xbf16, #tpu.memory_space<vmem>>, vector<16x44xbf16>
    tpu.vector_store %arg13[%c16_81, %c0_82], %82 {strides = array<i32>} : memref<112x44xbf16, #tpu.memory_space<vmem>>, vector<16x44xbf16>,
    %c0_83 = arith.constant 0 : index
    %c4_84 = arith.constant 4 : index
    %84 = vector.load %arg12[%c0_83, %c4_84] : memref<16x50xf32, #tpu.memory_space<vmem>>, vector<16x44xf32>
    %85 = arith.truncf %84 : vector<16x44xf32> to vector<16x44xbf16>
    %c32_85 = arith.constant 32 : index
    %c0_86 = arith.constant 0 : index
    %86 = vector.load %arg13[%c32_85, %c0_86] : memref<112x44xbf16, #tpu.memory_space<vmem>>, vector<16x44xbf16>
    tpu.vector_store %arg13[%c32_85, %c0_86], %85 {strides = array<i32>} : memref<112x44xbf16, #tpu.memory_space<vmem>>, vector<16x44xbf16>,
    %c0_87 = arith.constant 0 : index
    %c0_88 = arith.constant 0 : index
    %87 = vector.load %arg13[%c0_87, %c0_88] : memref<112x44xbf16, #tpu.memory_space<vmem>>, vector<48x44xbf16>
    %cst_89 = arith.constant dense<0.000000e+00> : vector<16x44xf32>
    %88 = tpu.matmul %77, %87, %cst_89 {dimension_numbers = #tpu.dot_dimension_numbers<[1], [0], [0], [1], [0, 0, 1, 1], [], []>} : vector<16x48xbf16>, vector<48x44xbf16>, vector<16x44xf32> -> vector<16x44xf32>
    %c0_90 = arith.constant 0 : index
    %c2_91 = arith.constant 2 : index
    %89 = vector.load %arg3[%c0_90, %c2_91] : memref<16x10xf32, #tpu.memory_space<vmem>>, vector<16x1xf32>
    %90 = vector.broadcast %89 : vector<16x1xf32> to vector<16x44xf32>
    %91 = arith.addf %88, %90 : vector<16x44xf32>
    %cst_92 = arith.constant 0.000000e+00 : f32
    %92 = vector.broadcast %cst_92 : f32 to vector<16x44xf32>
    %93 = arith.maximumf %91, %92 : vector<16x44xf32>
    %c0_93 = arith.constant 0 : index
    %c3_94 = arith.constant 3 : index
    %94 = vector.load %arg11[%c0_93, %c3_94] : memref<16x50xf32, #tpu.memory_space<vmem>>, vector<16x44xf32>
    %95 = arith.addf %93, %94 : vector<16x44xf32>
    %cst_95 = arith.constant 0.000000e+00 : f32
    %96 = vector.broadcast %cst_95 : f32 to vector<16x44xf32>
    %97 = arith.maximumf %95, %96 : vector<16x44xf32>
    %98 = vector.broadcast %0 : vector<1x44xf32> to vector<16x44xf32>
    %99 = arith.mulf %97, %98 : vector<16x44xf32>
    %c0_96 = arith.constant 0 : index
    %c3_97 = arith.constant 3 : index
    %100 = vector.load %arg11[%c0_96, %c3_97] : memref<16x50xf32, #tpu.memory_space<vmem>>, vector<16x44xf32>
    tpu.vector_store %arg11[%c0_96, %c3_97], %99 {strides = array<i32>} : memref<16x50xf32, #tpu.memory_space<vmem>>, vector<16x44xf32>,
    %c0_98 = arith.constant 0 : index
    %c0_99 = arith.constant 0 : index
    %101 = vector.load %arg7[%c0_98, %c0_99] : memref<16x112xbf16, #tpu.memory_space<vmem>>, vector<16x112xbf16>
    %c0_100 = arith.constant 0 : index
    %c0_101 = arith.constant 0 : index
    %102 = vector.load %arg11[%c0_100, %c0_101] : memref<16x50xf32, #tpu.memory_space<vmem>>, vector<16x44xf32>
    %103 = arith.truncf %102 : vector<16x44xf32> to vector<16x44xbf16>
    %c0_102 = arith.constant 0 : index
    %c0_103 = arith.constant 0 : index
    %104 = vector.load %arg13[%c0_102, %c0_103] : memref<112x44xbf16, #tpu.memory_space<vmem>>, vector<16x44xbf16>
    tpu.vector_store %arg13[%c0_102, %c0_103], %103 {strides = array<i32>} : memref<112x44xbf16, #tpu.memory_space<vmem>>, vector<16x44xbf16>,
    %c0_104 = arith.constant 0 : index
    %c1_105 = arith.constant 1 : index
    %105 = vector.load %arg11[%c0_104, %c1_105] : memref<16x50xf32, #tpu.memory_space<vmem>>, vector<16x44xf32>
    %106 = arith.truncf %105 : vector<16x44xf32> to vector<16x44xbf16>
    %c16_106 = arith.constant 16 : index
    %c0_107 = arith.constant 0 : index
    %107 = vector.load %arg13[%c16_106, %c0_107] : memref<112x44xbf16, #tpu.memory_space<vmem>>, vector<16x44xbf16>
    tpu.vector_store %arg13[%c16_106, %c0_107], %106 {strides = array<i32>} : memref<112x44xbf16, #tpu.memory_space<vmem>>, vector<16x44xbf16>,
    %c0_108 = arith.constant 0 : index
    %c2_109 = arith.constant 2 : index
    %108 = vector.load %arg11[%c0_108, %c2_109] : memref<16x50xf32, #tpu.memory_space<vmem>>, vector<16x44xf32>
    %109 = arith.truncf %108 : vector<16x44xf32> to vector<16x44xbf16>
    %c32_110 = arith.constant 32 : index
    %c0_111 = arith.constant 0 : index
    %110 = vector.load %arg13[%c32_110, %c0_111] : memref<112x44xbf16, #tpu.memory_space<vmem>>, vector<16x44xbf16>
    tpu.vector_store %arg13[%c32_110, %c0_111], %109 {strides = array<i32>} : memref<112x44xbf16, #tpu.memory_space<vmem>>, vector<16x44xbf16>,
    %c0_112 = arith.constant 0 : index
    %c3_113 = arith.constant 3 : index
    %111 = vector.load %arg11[%c0_112, %c3_113] : memref<16x50xf32, #tpu.memory_space<vmem>>, vector<16x44xf32>
    %112 = arith.truncf %111 : vector<16x44xf32> to vector<16x44xbf16>
    %c48_114 = arith.constant 48 : index
    %c0_115 = arith.constant 0 : index
    %113 = vector.load %arg13[%c48_114, %c0_115] : memref<112x44xbf16, #tpu.memory_space<vmem>>, vector<16x44xbf16>
    tpu.vector_store %arg13[%c48_114, %c0_115], %112 {strides = array<i32>} : memref<112x44xbf16, #tpu.memory_space<vmem>>, vector<16x44xbf16>,
    %c0_116 = arith.constant 0 : index
    %c4_117 = arith.constant 4 : index
    %114 = vector.load %arg11[%c0_116, %c4_117] : memref<16x50xf32, #tpu.memory_space<vmem>>, vector<16x44xf32>
    %115 = arith.truncf %114 : vector<16x44xf32> to vector<16x44xbf16>
    %c64_118 = arith.constant 64 : index
    %c0_119 = arith.constant 0 : index
    %116 = vector.load %arg13[%c64_118, %c0_119] : memref<112x44xbf16, #tpu.memory_space<vmem>>, vector<16x44xbf16>
    tpu.vector_store %arg13[%c64_118, %c0_119], %115 {strides = array<i32>} : memref<112x44xbf16, #tpu.memory_space<vmem>>, vector<16x44xbf16>,
    %c0_120 = arith.constant 0 : index
    %c5_121 = arith.constant 5 : index
    %117 = vector.load %arg11[%c0_120, %c5_121] : memref<16x50xf32, #tpu.memory_space<vmem>>, vector<16x44xf32>
    %118 = arith.truncf %117 : vector<16x44xf32> to vector<16x44xbf16>
    %c80 = arith.constant 80 : index
    %c0_122 = arith.constant 0 : index
    %119 = vector.load %arg13[%c80, %c0_122] : memref<112x44xbf16, #tpu.memory_space<vmem>>, vector<16x44xbf16>
    tpu.vector_store %arg13[%c80, %c0_122], %118 {strides = array<i32>} : memref<112x44xbf16, #tpu.memory_space<vmem>>, vector<16x44xbf16>,
    %c0_123 = arith.constant 0 : index
    %c6_124 = arith.constant 6 : index
    %120 = vector.load %arg11[%c0_123, %c6_124] : memref<16x50xf32, #tpu.memory_space<vmem>>, vector<16x44xf32>
    %121 = arith.truncf %120 : vector<16x44xf32> to vector<16x44xbf16>
    %c96 = arith.constant 96 : index
    %c0_125 = arith.constant 0 : index
    %122 = vector.load %arg13[%c96, %c0_125] : memref<112x44xbf16, #tpu.memory_space<vmem>>, vector<16x44xbf16>
    tpu.vector_store %arg13[%c96, %c0_125], %121 {strides = array<i32>} : memref<112x44xbf16, #tpu.memory_space<vmem>>, vector<16x44xbf16>,
    %c0_126 = arith.constant 0 : index
    %c0_127 = arith.constant 0 : index
    %123 = vector.load %arg13[%c0_126, %c0_127] : memref<112x44xbf16, #tpu.memory_space<vmem>>, vector<112x44xbf16>
    %cst_128 = arith.constant dense<0.000000e+00> : vector<16x44xf32>
    %124 = tpu.matmul %101, %123, %cst_128 {dimension_numbers = #tpu.dot_dimension_numbers<[1], [0], [0], [1], [0, 0, 1, 1], [], []>} : vector<16x112xbf16>, vector<112x44xbf16>, vector<16x44xf32> -> vector<16x44xf32>
    %c0_129 = arith.constant 0 : index
    %c5_130 = arith.constant 5 : index
    %125 = vector.load %arg3[%c0_129, %c5_130] : memref<16x10xf32, #tpu.memory_space<vmem>>, vector<16x1xf32>
    %126 = vector.broadcast %125 : vector<16x1xf32> to vector<16x44xf32>
    %127 = arith.addf %124, %126 : vector<16x44xf32>
    %cst_131 = arith.constant 0.000000e+00 : f32
    %128 = vector.broadcast %cst_131 : f32 to vector<16x44xf32>
    %129 = arith.maximumf %127, %128 : vector<16x44xf32>
    %130 = vector.broadcast %0 : vector<1x44xf32> to vector<16x44xf32>
    %131 = arith.mulf %129, %130 : vector<16x44xf32>
    %c0_132 = arith.constant 0 : index
    %c3_133 = arith.constant 3 : index
    %132 = vector.load %arg12[%c0_132, %c3_133] : memref<16x50xf32, #tpu.memory_space<vmem>>, vector<16x44xf32>
    tpu.vector_store %arg12[%c0_132, %c3_133], %131 {strides = array<i32>} : memref<16x50xf32, #tpu.memory_space<vmem>>, vector<16x44xf32>,
    %c0_134 = arith.constant 0 : index
    %c0_135 = arith.constant 0 : index
    %133 = vector.load %arg8[%c0_134, %c0_135] : memref<16x80xbf16, #tpu.memory_space<vmem>>, vector<16x80xbf16>
    %c0_136 = arith.constant 0 : index
    %c1_137 = arith.constant 1 : index
    %134 = vector.load %arg12[%c0_136, %c1_137] : memref<16x50xf32, #tpu.memory_space<vmem>>, vector<16x44xf32>
    %135 = arith.truncf %134 : vector<16x44xf32> to vector<16x44xbf16>
    %c0_138 = arith.constant 0 : index
    %c0_139 = arith.constant 0 : index
    %136 = vector.load %arg13[%c0_138, %c0_139] : memref<112x44xbf16, #tpu.memory_space<vmem>>, vector<16x44xbf16>
    tpu.vector_store %arg13[%c0_138, %c0_139], %135 {strides = array<i32>} : memref<112x44xbf16, #tpu.memory_space<vmem>>, vector<16x44xbf16>,
    %c0_140 = arith.constant 0 : index
    %c2_141 = arith.constant 2 : index
    %137 = vector.load %arg12[%c0_140, %c2_141] : memref<16x50xf32, #tpu.memory_space<vmem>>, vector<16x44xf32>
    %138 = arith.truncf %137 : vector<16x44xf32> to vector<16x44xbf16>
    %c16_142 = arith.constant 16 : index
    %c0_143 = arith.constant 0 : index
    %139 = vector.load %arg13[%c16_142, %c0_143] : memref<112x44xbf16, #tpu.memory_space<vmem>>, vector<16x44xbf16>
    tpu.vector_store %arg13[%c16_142, %c0_143], %138 {strides = array<i32>} : memref<112x44xbf16, #tpu.memory_space<vmem>>, vector<16x44xbf16>,
    %c0_144 = arith.constant 0 : index
    %c3_145 = arith.constant 3 : index
    %140 = vector.load %arg12[%c0_144, %c3_145] : memref<16x50xf32, #tpu.memory_space<vmem>>, vector<16x44xf32>
    %141 = arith.truncf %140 : vector<16x44xf32> to vector<16x44xbf16>
    %c32_146 = arith.constant 32 : index
    %c0_147 = arith.constant 0 : index
    %142 = vector.load %arg13[%c32_146, %c0_147] : memref<112x44xbf16, #tpu.memory_space<vmem>>, vector<16x44xbf16>
    tpu.vector_store %arg13[%c32_146, %c0_147], %141 {strides = array<i32>} : memref<112x44xbf16, #tpu.memory_space<vmem>>, vector<16x44xbf16>,
    %c0_148 = arith.constant 0 : index
    %c4_149 = arith.constant 4 : index
    %143 = vector.load %arg12[%c0_148, %c4_149] : memref<16x50xf32, #tpu.memory_space<vmem>>, vector<16x44xf32>
    %144 = arith.truncf %143 : vector<16x44xf32> to vector<16x44xbf16>
    %c48_150 = arith.constant 48 : index
    %c0_151 = arith.constant 0 : index
    %145 = vector.load %arg13[%c48_150, %c0_151] : memref<112x44xbf16, #tpu.memory_space<vmem>>, vector<16x44xbf16>
    tpu.vector_store %arg13[%c48_150, %c0_151], %144 {strides = array<i32>} : memref<112x44xbf16, #tpu.memory_space<vmem>>, vector<16x44xbf16>,
    %c0_152 = arith.constant 0 : index
    %c5_153 = arith.constant 5 : index
    %146 = vector.load %arg12[%c0_152, %c5_153] : memref<16x50xf32, #tpu.memory_space<vmem>>, vector<16x44xf32>
    %147 = arith.truncf %146 : vector<16x44xf32> to vector<16x44xbf16>
    %c64_154 = arith.constant 64 : index
    %c0_155 = arith.constant 0 : index
    %148 = vector.load %arg13[%c64_154, %c0_155] : memref<112x44xbf16, #tpu.memory_space<vmem>>, vector<16x44xbf16>
    tpu.vector_store %arg13[%c64_154, %c0_155], %147 {strides = array<i32>} : memref<112x44xbf16, #tpu.memory_space<vmem>>, vector<16x44xbf16>,
    %c0_156 = arith.constant 0 : index
    %c0_157 = arith.constant 0 : index
    %149 = vector.load %arg13[%c0_156, %c0_157] : memref<112x44xbf16, #tpu.memory_space<vmem>>, vector<80x44xbf16>
    %cst_158 = arith.constant dense<0.000000e+00> : vector<16x44xf32>
    %150 = tpu.matmul %133, %149, %cst_158 {dimension_numbers = #tpu.dot_dimension_numbers<[1], [0], [0], [1], [0, 0, 1, 1], [], []>} : vector<16x80xbf16>, vector<80x44xbf16>, vector<16x44xf32> -> vector<16x44xf32>
    %c0_159 = arith.constant 0 : index
    %c6_160 = arith.constant 6 : index
    %151 = vector.load %arg3[%c0_159, %c6_160] : memref<16x10xf32, #tpu.memory_space<vmem>>, vector<16x1xf32>
    %152 = vector.broadcast %151 : vector<16x1xf32> to vector<16x44xf32>
    %153 = arith.addf %150, %152 : vector<16x44xf32>
    %cst_161 = arith.constant 0.000000e+00 : f32
    %154 = vector.broadcast %cst_161 : f32 to vector<16x44xf32>
    %155 = arith.maximumf %153, %154 : vector<16x44xf32>
    %156 = vector.broadcast %0 : vector<1x44xf32> to vector<16x44xf32>
    %157 = arith.mulf %155, %156 : vector<16x44xf32>
    %c0_162 = arith.constant 0 : index
    %c3_163 = arith.constant 3 : index
    %158 = vector.load %arg12[%c0_162, %c3_163] : memref<16x50xf32, #tpu.memory_space<vmem>>, vector<16x44xf32>
    tpu.vector_store %arg12[%c0_162, %c3_163], %157 {strides = array<i32>} : memref<16x50xf32, #tpu.memory_space<vmem>>, vector<16x44xf32>,
    %c0_164 = arith.constant 0 : index
    %c0_165 = arith.constant 0 : index
    %159 = vector.load %arg9[%c0_164, %c0_165] : memref<16x48xbf16, #tpu.memory_space<vmem>>, vector<16x48xbf16>
    %c0_166 = arith.constant 0 : index
    %c2_167 = arith.constant 2 : index
    %160 = vector.load %arg12[%c0_166, %c2_167] : memref<16x50xf32, #tpu.memory_space<vmem>>, vector<16x44xf32>
    %161 = arith.truncf %160 : vector<16x44xf32> to vector<16x44xbf16>
    %c0_168 = arith.constant 0 : index
    %c0_169 = arith.constant 0 : index
    %162 = vector.load %arg13[%c0_168, %c0_169] : memref<112x44xbf16, #tpu.memory_space<vmem>>, vector<16x44xbf16>
    tpu.vector_store %arg13[%c0_168, %c0_169], %161 {strides = array<i32>} : memref<112x44xbf16, #tpu.memory_space<vmem>>, vector<16x44xbf16>,
    %c0_170 = arith.constant 0 : index
    %c3_171 = arith.constant 3 : index
    %163 = vector.load %arg12[%c0_170, %c3_171] : memref<16x50xf32, #tpu.memory_space<vmem>>, vector<16x44xf32>
    %164 = arith.truncf %163 : vector<16x44xf32> to vector<16x44xbf16>
    %c16_172 = arith.constant 16 : index
    %c0_173 = arith.constant 0 : index
    %165 = vector.load %arg13[%c16_172, %c0_173] : memref<112x44xbf16, #tpu.memory_space<vmem>>, vector<16x44xbf16>
    tpu.vector_store %arg13[%c16_172, %c0_173], %164 {strides = array<i32>} : memref<112x44xbf16, #tpu.memory_space<vmem>>, vector<16x44xbf16>,
    %c0_174 = arith.constant 0 : index
    %c4_175 = arith.constant 4 : index
    %166 = vector.load %arg12[%c0_174, %c4_175] : memref<16x50xf32, #tpu.memory_space<vmem>>, vector<16x44xf32>
    %167 = arith.truncf %166 : vector<16x44xf32> to vector<16x44xbf16>
    %c32_176 = arith.constant 32 : index
    %c0_177 = arith.constant 0 : index
    %168 = vector.load %arg13[%c32_176, %c0_177] : memref<112x44xbf16, #tpu.memory_space<vmem>>, vector<16x44xbf16>
    tpu.vector_store %arg13[%c32_176, %c0_177], %167 {strides = array<i32>} : memref<112x44xbf16, #tpu.memory_space<vmem>>, vector<16x44xbf16>,
    %c0_178 = arith.constant 0 : index
    %c0_179 = arith.constant 0 : index
    %169 = vector.load %arg13[%c0_178, %c0_179] : memref<112x44xbf16, #tpu.memory_space<vmem>>, vector<48x44xbf16>
    %cst_180 = arith.constant dense<0.000000e+00> : vector<16x44xf32>
    %170 = tpu.matmul %159, %169, %cst_180 {dimension_numbers = #tpu.dot_dimension_numbers<[1], [0], [0], [1], [0, 0, 1, 1], [], []>} : vector<16x48xbf16>, vector<48x44xbf16>, vector<16x44xf32> -> vector<16x44xf32>
    %c0_181 = arith.constant 0 : index
    %c7 = arith.constant 7 : index
    %171 = vector.load %arg3[%c0_181, %c7] : memref<16x10xf32, #tpu.memory_space<vmem>>, vector<16x1xf32>
    %172 = vector.broadcast %171 : vector<16x1xf32> to vector<16x44xf32>
    %173 = arith.addf %170, %172 : vector<16x44xf32>
    %cst_182 = arith.constant 0.000000e+00 : f32
    %174 = vector.broadcast %cst_182 : f32 to vector<16x44xf32>
    %175 = arith.maximumf %173, %174 : vector<16x44xf32>
    %c0_183 = arith.constant 0 : index
    %c3_184 = arith.constant 3 : index
    %176 = vector.load %arg11[%c0_183, %c3_184] : memref<16x50xf32, #tpu.memory_space<vmem>>, vector<16x44xf32>
    %c0_185 = arith.constant 0 : index
    %c9 = arith.constant 9 : index
    %177 = vector.load %arg3[%c0_185, %c9] : memref<16x10xf32, #tpu.memory_space<vmem>>, vector<16x1xf32>
    %178 = vector.broadcast %177 : vector<16x1xf32> to vector<16x44xf32>
    %179 = arith.mulf %176, %178 : vector<16x44xf32>
    %c0_186 = arith.constant 0 : index
    %c8_187 = arith.constant 8 : index
    %180 = vector.load %arg3[%c0_186, %c8_187] : memref<16x10xf32, #tpu.memory_space<vmem>>, vector<16x1xf32>
    %181 = vector.broadcast %180 : vector<16x1xf32> to vector<16x44xf32>
    %182 = arith.addf %179, %181 : vector<16x44xf32>
    %183 = arith.addf %175, %182 : vector<16x44xf32>
    %cst_188 = arith.constant 0.000000e+00 : f32
    %184 = vector.broadcast %cst_188 : f32 to vector<16x44xf32>
    %185 = arith.maximumf %183, %184 : vector<16x44xf32>
    %c0_189 = arith.constant 0 : index
    %c0_190 = arith.constant 0 : index
    %c0_191 = arith.constant 0 : index
    %186 = vector.load %arg10[%c0_189, %c0_190, %c0_191] : memref<1x16x44xf32, #tpu.memory_space<vmem>>, vector<1x16x44xf32>
    %187 = vector.shape_cast %186 : vector<1x16x44xf32> to vector<16x44xf32>
    %188 = vector.shape_cast %185 : vector<16x44xf32> to vector<1x16x44xf32>
    tpu.vector_store %arg10[%c0_189, %c0_190, %c0_191], %188 {strides = array<i32>} : memref<1x16x44xf32, #tpu.memory_space<vmem>>, vector<1x16x44xf32>,
    return
  }
  func.func @transform_0(%arg0: i32) -> (i32, i32, i32) {
    %c0_i32 = arith.constant 0 : i32
    %c0_i32_0 = arith.constant 0 : i32
    %c0_i32_1 = arith.constant 0 : i32
    return %arg0, %c0_i32, %c0_i32_0 : i32, i32, i32
  }
  func.func @transform_1(%arg0: i32) -> (i32, i32) {
    %c0_i32 = arith.constant 0 : i32
    %c0_i32_0 = arith.constant 0 : i32
    %c0_i32_1 = arith.constant 0 : i32
    return %c0_i32, %c0_i32_0 : i32, i32
  }
  func.func @transform_2(%arg0: i32) -> (i32, i32) {
    %c0_i32 = arith.constant 0 : i32
    %c0_i32_0 = arith.constant 0 : i32
    %c0_i32_1 = arith.constant 0 : i32
    return %c0_i32, %c0_i32_0 : i32, i32
  }
  func.func @transform_3(%arg0: i32) -> (i32, i32) {
    %c0_i32 = arith.constant 0 : i32
    %c0_i32_0 = arith.constant 0 : i32
    %c0_i32_1 = arith.constant 0 : i32
    return %c0_i32, %c0_i32_0 : i32, i32
  }
  func.func @transform_4(%arg0: i32) -> (i32, i32) {
    %c0_i32 = arith.constant 0 : i32
    %c0_i32_0 = arith.constant 0 : i32
    %c0_i32_1 = arith.constant 0 : i32
    return %c0_i32, %c0_i32_0 : i32, i32
  }
  func.func @transform_5(%arg0: i32) -> (i32, i32) {
    %c0_i32 = arith.constant 0 : i32
    %c0_i32_0 = arith.constant 0 : i32
    %c0_i32_1 = arith.constant 0 : i32
    return %c0_i32, %c0_i32_0 : i32, i32
  }
  func.func @transform_6(%arg0: i32) -> (i32, i32) {
    %c0_i32 = arith.constant 0 : i32
    %c0_i32_0 = arith.constant 0 : i32
    %c0_i32_1 = arith.constant 0 : i32
    return %c0_i32, %c0_i32_0 : i32, i32
  }
  func.func @transform_7(%arg0: i32) -> (i32, i32) {
    %c0_i32 = arith.constant 0 : i32
    %c0_i32_0 = arith.constant 0 : i32
    %c0_i32_1 = arith.constant 0 : i32
    return %c0_i32, %c0_i32_0 : i32, i32
  }
  func.func @transform_8(%arg0: i32) -> (i32, i32) {
    %c0_i32 = arith.constant 0 : i32
    %c0_i32_0 = arith.constant 0 : i32
    %c0_i32_1 = arith.constant 0 : i32
    return %c0_i32, %c0_i32_0 : i32, i32
  }
  func.func @transform_9(%arg0: i32) -> (i32, i32, i32) {
    %c0_i32 = arith.constant 0 : i32
    %c0_i32_0 = arith.constant 0 : i32
    %c0_i32_1 = arith.constant 0 : i32
    return %arg0, %c0_i32, %c0_i32_0 : i32, i32, i32
  }
}

</mosaic_0001>

<bundles_post_ra>
// kernel: resnet1d_forward.1
= control target key start
LH: loop header
LB: loop body
LE: loop exit
PB: predicated region body
PF: predicated region fallthrough
CT: control target
= control target key end

     0   :  { %s1027_s23 = smov 124   ;;  %vm50_vm0 = vcmask 353280   ;;  %s1028_s24 = smov 127   ;;  %vm114_vm1 = vcmask 228352   ;;  %v1033_v20 = vmov 0   ;;  %vm59_vm2 = vcmask 355330   ;;  %s1330_s0 = inlined_call_operand.vmem [shape: f32[1,4,50], index: 0, kind: input, shape index: {}]   ;;  %s1331_s3 = inlined_call_operand.vmem [shape: bf16[32,28], index: 3, kind: input, shape index: {}]   ;;  %s1332_s2 = inlined_call_operand.vmem [shape: f32[16,10], index: 2, kind: input, shape index: {}]   ;;  %s1333_s1 = inlined_call_operand.vmem [shape: f32[1,44], index: 1, kind: input, shape index: {}]   ;;  %s1334_s4 = inlined_call_operand.vmem [shape: bf16[16,80], index: 4, kind: input, shape index: {}]   ;;  %s1335_s5 = inlined_call_operand.vmem [shape: bf16[16,48], index: 5, kind: input, shape index: {}]   ;;  %s1336_s6 = inlined_call_operand.vmem [shape: bf16[16,112], index: 6, kind: input, shape index: {}]   ;;  %s1337_s7 = inlined_call_operand.vmem [shape: bf16[16,80], index: 7, kind: input, shape index: {}]   ;;  %s1338_s8 = inlined_call_operand.vmem [shape: bf16[16,48], index: 8, kind: input, shape index: {}]   ;;  %s1339_s9 = inlined_call_operand.vmem [shape: f32[1,16,44], index: 9, kind: output, shape index: {}]  }
   0x1   :  { %v79_v0 = vld [vmem:[%s1330_s0] sm:$0xf]  ;;  %s1029_s25 = smov 125   ;;  %s1031_s28 = smov 122   ;;  %1004 = vset.pattern.permute.xlu1 %v1033_v20  ;;  %v1130_v21 = vld [vmem:[%s1332_s2 + $0x8] sm:$0xff]  ;;  %1003 = vset.pattern.permute.xlu0 %v1033_v20  ;;  %vm77_vm3 = vcmask 359430  }
   0x2   :  { %v52_v1 = vld [vmem:[%s1330_s0] sm:$0xf]  ;;  %v80_v3 = vpack.c.bf16 %v79_v0, %v79_v0  ;;  %s1032_s29 = smov 123   ;;  %vm68_vm4 = vcmask 357380   ;;  %vm121_vm5 = vcmask 1045504   ;;  %v1021_v32 = vld [vmem:[%s1331_s3 + $0x8] sm:$0xff]  }
   0x3   :  { %v70_v2 = vld [vmem:[%s1330_s0] sm:$0xf]  ;;  %v53_v4 = vpack.c.bf16 %v52_v1, %v52_v1  ;;  %vm34_vm6 = vcmask 23552   ;;  %vm37_vm7 = vcmask 408952   ;;  %v1034_v33 = vmov 0.0   ;;  %s1035_s15 = smov 3  }
   0x4   :  { %v71_v5 = vpack.c.bf16 %v70_v2, %v70_v2  ;;  %v61_v6 = vld [vmem:[%s1330_s0] sm:$0xf]  ;;  %82 = vrot.lane.b32.xlu1 %v80_v3, %s1027_s23  ;;  %40 = vst.msk [vmem:[#allocation3] sm:$0xff] %vm34_vm6, %v1034_v33  ;;  %35 = vst.msk [vmem:[#allocation2] sm:$0xff] %vm34_vm6, %v1034_v33  ;;  %918 = vmatprep.subr.bf16.mxu1 %v1034_v33  ;;  %vm208_vm8 = vcmask 384024   ;;  %vm1036_vm9 = vmmov 0  }
   0x5   :  { %v94_v7 = vld [vmem:[%s1330_s0] sm:$0xf]  ;;  %v62_v8 = vpack.c.bf16 %v61_v6, %v61_v6  ;;  %v55_v11 = vrot.slane %v53_v4, 6  ;;  %36 = vst.msk [vmem:[#allocation2 + $0x8] sm:$0xff] %vm34_vm6, %v1034_v33  ;;  %41 = vst.msk [vmem:[#allocation3 + $0x8] sm:$0xff] %vm34_vm6, %v1034_v33  ;;  %928 = vmatprep.mubr.msk.bf16.mxu1 %vm1036_vm9, %v1034_v33  ;;  %v1037_v52 = vmov 1  }
   0x6   :  { %v86_v9 = vld [vmem:[%s1330_s0] sm:$0xf]  ;;  %v73_v12 = vrot.slane %v71_v5, 2  ;;  %v95_v13 = vpack.c.bf16 %v94_v7, %v94_v7  ;;  %42 = vst.msk [vmem:[#allocation3] sm:$0xff] %vm37_vm7, %v1034_v33  ;;  %43 = vst.msk [vmem:[#allocation3 + $0x8] sm:$0xff] %vm37_vm7, %v1034_v33  ;;  %vm238_vm10 = vcmask 359424  }
   0x7   :  { %v48_v10 = vld [vmem:[%s1330_s0] sm:$0xf]  ;;  %v87_v15 = vpack.c.bf16 %v86_v9, %v86_v9  ;;  %56 = vrot.lane.b32.xlu0 %v55_v11, %s1028_s24  ;;  %v64_v16 = vrot.slane %v62_v8, 4  ;;  %s1030_s0 = smov 126   ;;  %38 = vst.msk [vmem:[#allocation2] sm:$0xff] %vm37_vm7, %v1034_v33  ;;  %39 = vst.msk [vmem:[#allocation2 + $0x8] sm:$0xff] %vm37_vm7, %v1034_v33 }
   0x8   :  { %v49_v14 = vpack.c.bf16 %v48_v10, %v48_v10  ;;  %74 = vrot.lane.b32.xlu1 %v73_v12, %s1029_s25  ;;  %v97_v17 = vrot.slane %v95_v13, 4  ;;  %v1020_v19 = vld [vmem:[%s1331_s3] sm:$0xff]   ;;  %vm294_vm11 = vcmask 654336   ;;  %v1038_v12 = vmov 3  }
   0x9   :  { %v89_v18 = vrot.slane %v87_v15, 6  ;;  %914 = vmatprep.mubr.msk.bf16.mxu0 %vm114_vm1, %v1020_v19  ;;  %v1135_v22 = vld [vmem:[%s1332_s2] sm:$0xff]  ;;  %vm399_vm12 = vcmask 392192   ;;  %vm550_vm13 = vcmask 916480  }
   0xa   :  { %51 = vst.msk [vmem:[#allocation4] sm:$0x3] %vm50_vm0, %v49_v14  ;;  %v1161_v40 = vld [vmem:[%s1333_s1] ss:$0 sm:$0xff] }
   0xb   :  { %65 = vrot.lane.b32.xlu0 %v64_v16, %s1030_s0  ;;  %v1022_v63 = vld [vmem:[%s1334_s4] sm:$0xff]  }
   0xc   :  { %98 = vrot.lane.b32.xlu1 %v97_v17, %s1031_s28 }
   0xf   :  { %90 = vrot.lane.b32.xlu0 %v89_v18, %s1032_s29  ;;  %v1039_v18 = vmov 2  }
  0x10   :  { %183 = vperm.xlu1 %1004, %v1130_v21  }
  0x13   :  { %178 = vperm.xlu0 %1003, %v1135_v22  }
  0x14   :  { %1006 = vset.pattern.permute.xlu1 %v1037_v52 }
  0x17   :  { %1005 = vset.pattern.permute.xlu0 %v1037_v52 }
  0x76   :  { %v83_v23 = vpop.permute.xlu1 %82 }
  0x77   :  { %85 = vst.msk [vmem:[#allocation4 + $0x8] sm:$0x3] %vm50_vm0, %v83_v23 }
  0x79   :  { %v57_v24 = vpop.permute.xlu0 %56 }
  0x7a   :  { %60 = vst.msk [vmem:[#allocation4] sm:$0xc] %vm59_vm2, %v57_v24  ;;  %v75_v25 = vpop.permute.xlu1 %74 }
  0x7b   :  { %78 = vst.msk [vmem:[#allocation4] sm:$0xc0] %vm77_vm3, %v75_v25 }
  0x7d   :  { %v66_v26 = vpop.permute.xlu0 %65 }
  0x7e   :  { %69 = vst.msk [vmem:[#allocation4] sm:$0x30] %vm68_vm4, %v66_v26  ;;  %v99_v27 = vpop.permute.xlu1 %98 }
  0x7f   :  { %101 = vst.msk [vmem:[#allocation4 + $0x8] sm:$0x30] %vm68_vm4, %v99_v27  ;;  %v1023_v27 = vld [vmem:[%s1335_s5] sm:$0xff]  }
  0x81   :  { %v91_v28 = vpop.permute.xlu0 %90 }
  0x82   :  { %93 = vst.msk [vmem:[#allocation4 + $0x8] sm:$0xc] %vm59_vm2, %v91_v28 }
  0x85   :  { %v102_v29 = vld [vmem:[#allocation4] sm:$0xff] }
  0x86   :  { %910 = vmatprep.subr.bf16.mxu0 %v102_v29 }
  0x87   :  { %911 = vmatpush3.bf16.msra.mxu0 %v102_v29 }
  0x89   :  { %v103_v30 = vld [vmem:[#allocation4 + $0x8] sm:$0x3f] }
  0x8a   :  { %984 = vmatprep.subr.msk.bf16.mxu0 %vm121_vm5, %v103_v30  ;;  %v123_v31 = vsel %vm121_vm5, %v103_v30, 0 }
  0x8b   :  { %913 = vmatpush3.bf16.msra.mxu0 %v123_v31 }
  0x8c   :  { %932 = vmatprep.subr.bf16.mxu0 %v1034_v33 }
  0x8e   :  { %915 = vmatmul.mubr.msk.bf16.vlgmr.msra.gmra.mrb[0].mxu0 %vm114_vm1, %v1021_v32 }
  0x8f   :  { %v184_v37 = vpop.permute.xlu1 %183  ;;  %938 = vmatprep.mubr.msk.bf16.mxu0 %vm1036_vm9, %v1034_v33 }
  0x92   :  { %v179_v34 = vpop.permute.xlu0 %178 }
 0x161   :  { %v1154_v35 = vpop.f32.mrb[0].mxu0 }
 0x162   :  { %v159_v36 = vpop.f32.mrb[1].mxu0 }
 0x163   :  { %v186_v38 = vadd.f32 %v179_v34, %v159_v36  ;;  %v1156_v39 = vpop.f32.mrb[2].mxu0 }
 0x164   :  { %v162_v41 = vpop.f32.mrb[3].mxu0 }
 0x165   :  { %v188_v42 = vmax.f32 %v186_v38, 0.0  ;;  %v187_v43 = vadd.f32 %v184_v37, %v162_v41 }
 0x167   :  { %v217_v44 = vmul.f32 %v1161_v40, %v188_v42  ;;  %v189_v45 = vmax.f32 %v187_v43, 0.0 }
 0x169   :  { %v218_v46 = vmul.f32 %v1161_v40, %v189_v45  ;;  %221 = vrot.lane.b32.xlu1 %v217_v44, %s1035_s15 }
 0x16b   :  { %223 = vrot.lane.b32.xlu0 %v218_v46, %s1035_s15 }
 0x1db   :  { %v222_v47 = vpop.permute.xlu1 %221 }
 0x1dc   :  { %227 = vst.msk [vmem:[#allocation3] sm:$0xff] %vm208_vm8, %v222_v47 }
 0x1dd   :  { %v224_v48 = vpop.permute.xlu0 %223 }
 0x1de   :  { %228 = vst.msk [vmem:[#allocation3 + $0x8] sm:$0xff] %vm208_vm8, %v224_v48 }
 0x1e3   :  { %v240_v49 = vld [vmem:[#allocation3] sm:$0xff] }
 0x1e5   :  { %v241_v50 = vld [vmem:[#allocation3 + $0x8] sm:$0xff] }
 0x1e6   :  { %v242_v51 = vpack.c.bf16 %v241_v50, %v240_v49 }
 0x1e8   :  { %244 = vrot.lane.b32.xlu0 %v242_v51, %s1030_s0  ;;  %235 = vrot.lane.b32.xlu1 %v242_v51, %s1028_s24 }
 0x1ec   :  { %260 = vrot.lane.b32.xlu0 %v242_v51, %s1027_s23  ;;  %252 = vrot.lane.b32.xlu1 %v242_v51, %s1029_s25 }
 0x1f0   :  { %268 = vrot.lane.b32.xlu1 %v242_v51, %s1032_s29  ;;  %281 = vperm.xlu0 %1005, %v1135_v22  }
 0x1f4   :  { %286 = vperm.xlu1 %1006, %v1130_v21   ;;  %1007 = vset.pattern.permute.xlu0 %v1038_v12 }
 0x1f8   :  { %1008 = vset.pattern.permute.xlu1 %v1038_v12 }
 0x25a   :  { %v245_v53 = vpop.permute.xlu0 %244  ;;  %v236_v54 = vpop.permute.xlu1 %235 }
 0x25b   :  { %247 = vst.msk [vmem:[#allocation4 + $0x8] sm:$0xff] %vm238_vm10, %v245_v53  ;;  %239 = vst.msk [vmem:[#allocation4] sm:$0xff] %vm238_vm10, %v236_v54 }
 0x25e   :  { %v261_v55 = vpop.permute.xlu0 %260  ;;  %v253_v56 = vpop.permute.xlu1 %252 }
 0x25f   :  { %263 = vst.msk [vmem:[#allocation4 + $0x18] sm:$0xff] %vm238_vm10, %v261_v55  ;;  %255 = vst.msk [vmem:[#allocation4 + $0x10] sm:$0xff] %vm238_vm10, %v253_v56 }
 0x262   :  { %v269_v57 = vpop.permute.xlu1 %268  ;;  %v272_v58 = vld [vmem:[#allocation4] sm:$0xff]  ;;  %v273_v59 = vld [vmem:[#allocation4 + $0x8] sm:$0xff] }
 0x263   :  { %271 = vst.msk [vmem:[#allocation4 + $0x20] sm:$0xff] %vm238_vm10, %v269_v57  ;;  %919 = vmatpush3.bf16.msra.mxu1 %v272_v58 }
 0x264   :  { %920 = vmatprep.subr.bf16.mxu1 %v1034_v33 }
 0x266   :  { %v274_v60 = vld [vmem:[#allocation4 + $0x10] sm:$0xff]  ;;  %v275_v61 = vld [vmem:[#allocation4 + $0x18] sm:$0xff] }
 0x267   :  { %921 = vmatpush3.bf16.msra.mxu1 %v273_v59 }
 0x268   :  { %922 = vmatprep.subr.bf16.mxu1 %v1034_v33 }
 0x26a   :  { %v276_v62 = vld [vmem:[#allocation4 + $0x20] sm:$0xff] }
 0x26b   :  { %923 = vmatpush3.bf16.msra.mxu1 %v274_v60 }
 0x26c   :  { %924 = vmatprep.subr.bf16.mxu1 %v1034_v33 }
 0x26f   :  { %925 = vmatpush3.bf16.msra.mxu1 %v275_v61  ;;  %v282_v0 = vpop.permute.xlu0 %281 }
 0x270   :  { %926 = vmatprep.subr.bf16.mxu1 %v1034_v33 }
 0x273   :  { %927 = vmatpush3.bf16.msra.mxu1 %v276_v62  ;;  %v287_v2 = vpop.permute.xlu1 %286  ;;  %v1040_v62 = vmov 5  }
 0x274   :  { %960 = vmatprep.subr.bf16.mxu1 %v1034_v33 }
 0x276   :  { %929 = vmatmul.mubr.msk.bf16.vlgmr.msra.gmra.mrb[0].mxu1 %vm294_vm11, %v1022_v63 }
 0x277   :  { %970 = vmatprep.mubr.msk.bf16.mxu1 %vm1036_vm9, %v1034_v33 }
 0x349   :  { %v332_v1 = vpop.f32.mrb[0].mxu1 }
 0x34a   :  { %v333_v3 = vadd.f32 %v332_v1, %v282_v0  ;;  %v930_v4 = vpop.f32.mrb[1].mxu1 }
 0x34b   :  { %v335_v5 = vpop.f32.mrb[2].mxu1 }
 0x34c   :  { %v339_v6 = vmax.f32 %v333_v3, 0.0  ;;  %v336_v7 = vadd.f32 %v335_v5, %v287_v2  ;;  %v931_v8 = vpop.f32.mrb[3].mxu1 }
 0x34e   :  { %v341_v9 = vmul.f32 %v1161_v40, %v339_v6  ;;  %v340_v10 = vmax.f32 %v336_v7, 0.0 }
 0x350   :  { %v342_v11 = vmul.f32 %v1161_v40, %v340_v10  ;;  %345 = vrot.lane.b32.xlu1 %v341_v9, %s1035_s15 }
 0x352   :  { %347 = vrot.lane.b32.xlu0 %v342_v11, %s1035_s15  ;;  %v1024_v11 = vld [vmem:[%s1336_s6] sm:$0xff]  }
 0x3c2   :  { %v346_v13 = vpop.permute.xlu1 %345 }
 0x3c3   :  { %351 = vst.msk [vmem:[#allocation3] sm:$0xff] %vm208_vm8, %v346_v13 }
 0x3c4   :  { %v348_v14 = vpop.permute.xlu0 %347 }
 0x3c5   :  { %352 = vst.msk [vmem:[#allocation3 + $0x8] sm:$0xff] %vm208_vm8, %v348_v14 }
 0x3ca   :  { %v363_v15 = vld [vmem:[#allocation3] sm:$0xff] }
 0x3cc   :  { %v364_v16 = vld [vmem:[#allocation3 + $0x8] sm:$0xff] }
 0x3cd   :  { %v365_v17 = vpack.c.bf16 %v364_v16, %v363_v15 }
 0x3cf   :  { %367 = vrot.lane.b32.xlu0 %v365_v17, %s1029_s25  ;;  %359 = vrot.lane.b32.xlu1 %v365_v17, %s1030_s0 }
 0x3d3   :  { %191 = vperm.xlu0 %1007, %v1135_v22   ;;  %375 = vrot.lane.b32.xlu1 %v365_v17, %s1027_s23 }
 0x3d7   :  { %195 = vperm.xlu1 %1008, %v1130_v21   ;;  %1010 = vset.pattern.permute.xlu0 %v1039_v18 }
 0x3db   :  { %1009 = vset.pattern.permute.xlu1 %v1039_v18 }
 0x441   :  { %v368_v19 = vpop.permute.xlu0 %367  ;;  %v360_v20 = vpop.permute.xlu1 %359 }
 0x442   :  { %370 = vst.msk [vmem:[#allocation4 + $0x8] sm:$0xff] %vm238_vm10, %v368_v19  ;;  %362 = vst.msk [vmem:[#allocation4] sm:$0xff] %vm238_vm10, %v360_v20 }
 0x445   :  { %v376_v23 = vpop.permute.xlu1 %375 }
 0x446   :  { %378 = vst.msk [vmem:[#allocation4 + $0x10] sm:$0xff] %vm238_vm10, %v376_v23 }
 0x449   :  { %v379_v24 = vld [vmem:[#allocation4] sm:$0xff]  ;;  %v380_v25 = vld [vmem:[#allocation4 + $0x8] sm:$0xff] }
 0x44a   :  { %933 = vmatpush3.bf16.msra.mxu0 %v379_v24 }
 0x44b   :  { %934 = vmatprep.subr.bf16.mxu0 %v1034_v33 }
 0x44d   :  { %v381_v26 = vld [vmem:[#allocation4 + $0x10] sm:$0xff] }
 0x44e   :  { %935 = vmatpush3.bf16.msra.mxu0 %v380_v25 }
 0x44f   :  { %936 = vmatprep.subr.bf16.mxu0 %v1034_v33 }
 0x452   :  { %v192_v28 = vpop.permute.xlu0 %191  ;;  %937 = vmatpush3.bf16.msra.mxu0 %v381_v26 }
 0x453   :  { %v198_v29 = vadd.f32 %v1154_v35, %v192_v28  ;;  %942 = vmatprep.subr.bf16.mxu0 %v1034_v33 }
 0x455   :  { %202 = vrot.lane.b32.xlu1 %v198_v29, %s1035_s15  ;;  %939 = vmatmul.mubr.msk.bf16.vlgmr.msra.gmra.mrb[4].mxu0 %vm399_vm12, %v1023_v27 }
 0x456   :  { %v196_v30 = vpop.permute.xlu1 %195  ;;  %956 = vmatprep.mubr.msk.bf16.mxu0 %vm1036_vm9, %v1034_v33 }
 0x457   :  { %v199_v31 = vadd.f32 %v1156_v39, %v196_v30 }
 0x459   :  { %204 = vrot.lane.b32.xlu0 %v199_v31, %s1035_s15  ;;  %386 = vperm.xlu1 %1009, %v1135_v22   ;;  %v1041_v31 = vmov 6  }
 0x45d   :  { %391 = vperm.xlu0 %1010, %v1130_v21   ;;  %1012 = vset.pattern.permute.xlu1 %v1040_v62 }
 0x461   :  { %1011 = vset.pattern.permute.xlu0 %v1040_v62 }
 0x4c7   :  { %v203_v32 = vpop.permute.xlu1 %202 }
 0x4c8   :  { %209 = vst.msk [vmem:[#allocation2] sm:$0xff] %vm208_vm8, %v203_v32 }
 0x4cb   :  { %v205_v34 = vpop.permute.xlu0 %204 }
 0x4cc   :  { %210 = vst.msk [vmem:[#allocation2 + $0x8] sm:$0xff] %vm208_vm8, %v205_v34 }
 0x4cf   :  { %v446_v35 = vld [vmem:[#allocation2] sm:$0xff] }
 0x4d0   :  { %450 = vrot.lane.b32.xlu1 %v446_v35, %s1029_s25 }
 0x4d3   :  { %v447_v36 = vld [vmem:[#allocation2 + $0x8] sm:$0xff] }
 0x4d4   :  { %452 = vrot.lane.b32.xlu1 %v447_v36, %s1029_s25 }
 0x4d8   :  { %v387_v42 = vpop.permute.xlu1 %386 }
 0x4dc   :  { %v392_v44 = vpop.permute.xlu0 %391 }
 0x528   :  { %v437_v37 = vpop.f32.mrb[4].mxu0 }
 0x529   :  { %v940_v38 = vpop.f32.mrb[5].mxu0  ;;  %v438_v43 = vadd.f32 %v437_v37, %v387_v42 }
 0x52a   :  { %v440_v39 = vpop.f32.mrb[6].mxu0 }
 0x52b   :  { %v941_v41 = vpop.f32.mrb[7].mxu0  ;;  %v444_v45 = vmax.f32 %v438_v43, 0.0  ;;  %v441_v46 = vadd.f32 %v440_v39, %v392_v44  ;;  %v1025_v44 = vld [vmem:[%s1337_s7] sm:$0xff]  }
 0x52d   :  { %v445_v49 = vmax.f32 %v441_v46, 0.0 }
 0x542   :  { %v451_v47 = vpop.permute.xlu1 %450 }
 0x543   :  { %v456_v48 = vadd.f32 %v451_v47, %v444_v45 }
 0x545   :  { %v458_v50 = vmax.f32 %v456_v48, 0.0 }
 0x546   :  { %v453_v51 = vpop.permute.xlu1 %452 }
 0x547   :  { %v460_v52 = vmul.f32 %v1161_v40, %v458_v50  ;;  %v457_v53 = vadd.f32 %v453_v51, %v445_v49 }
 0x549   :  { %v459_v54 = vmax.f32 %v457_v53, 0.0  ;;  %464 = vrot.lane.b32.xlu0 %v460_v52, %s1035_s15 }
 0x54b   :  { %v461_v55 = vmul.f32 %v1161_v40, %v459_v54 }
 0x54d   :  { %466 = vrot.lane.b32.xlu1 %v461_v55, %s1035_s15 }
 0x5bb   :  { %v465_v56 = vpop.permute.xlu0 %464 }
 0x5bc   :  { %470 = vst.msk [vmem:[#allocation2] sm:$0xff] %vm208_vm8, %v465_v56 }
 0x5bf   :  { %v467_v57 = vpop.permute.xlu1 %466 }
 0x5c0   :  { %471 = vst.msk [vmem:[#allocation2 + $0x8] sm:$0xff] %vm208_vm8, %v467_v57  ;;  %v1042_v57 = vmov 9  }
 0x5c3   :  { %v1235_v58 = vld [vmem:[#allocation2] sm:$0xff] }
 0x5c7   :  { %v1237_v59 = vld [vmem:[#allocation2 + $0x8] sm:$0xff] }
 0x5c8   :  { %v476_v60 = vpack.c.bf16 %v1237_v59, %v1235_v58 }
 0x5ca   :  { %477 = vst.msk [vmem:[#allocation4] sm:$0xff] %vm238_vm10, %v476_v60  ;;  %490 = vrot.lane.b32.xlu1 %v476_v60, %s1030_s0  ;;  %482 = vrot.lane.b32.xlu0 %v476_v60, %s1028_s24 }
 0x5ce   :  { %506 = vrot.lane.b32.xlu1 %v476_v60, %s1027_s23  ;;  %498 = vrot.lane.b32.xlu0 %v476_v60, %s1029_s25 }
 0x5d1   :  { %v526_v61 = vld [vmem:[#allocation4] sm:$0xff] }
 0x5d2   :  { %522 = vrot.lane.b32.xlu1 %v476_v60, %s1031_s28  ;;  %514 = vrot.lane.b32.xlu0 %v476_v60, %s1032_s29 }
 0x5d3   :  { %943 = vmatpush3.bf16.msra.mxu0 %v526_v61 }
 0x5d4   :  { %944 = vmatprep.subr.bf16.mxu0 %v1034_v33 }
 0x5d6   :  { %537 = vperm.xlu0 %1011, %v1135_v22   ;;  %542 = vperm.xlu1 %1012, %v1130_v21  }
 0x5da   :  { %1013 = vset.pattern.permute.xlu0 %v1041_v31  ;;  %1014 = vset.pattern.permute.xlu1 %v1041_v31 }
 0x63c   :  { %v491_v63 = vpop.permute.xlu1 %490  ;;  %v483_v0 = vpop.permute.xlu0 %482 }
 0x63d   :  { %493 = vst.msk [vmem:[#allocation4 + $0x10] sm:$0xff] %vm238_vm10, %v491_v63  ;;  %485 = vst.msk [vmem:[#allocation4 + $0x8] sm:$0xff] %vm238_vm10, %v483_v0 }
 0x640   :  { %v507_v1 = vpop.permute.xlu1 %506  ;;  %v499_v2 = vpop.permute.xlu0 %498 }
 0x641   :  { %509 = vst.msk [vmem:[#allocation4 + $0x20] sm:$0xff] %vm238_vm10, %v507_v1  ;;  %501 = vst.msk [vmem:[#allocation4 + $0x18] sm:$0xff] %vm238_vm10, %v499_v2  ;;  %v1044_v1 = vmov 7  }
 0x644   :  { %v523_v3 = vpop.permute.xlu1 %522  ;;  %v515_v4 = vpop.permute.xlu0 %514  ;;  %v527_v5 = vld [vmem:[#allocation4 + $0x8] sm:$0xff]  ;;  %v528_v6 = vld [vmem:[#allocation4 + $0x10] sm:$0xff] }
 0x645   :  { %525 = vst.msk [vmem:[#allocation4 + $0x30] sm:$0xff] %vm238_vm10, %v523_v3  ;;  %517 = vst.msk [vmem:[#allocation4 + $0x28] sm:$0xff] %vm238_vm10, %v515_v4  ;;  %945 = vmatpush3.bf16.msra.mxu0 %v527_v5 }
 0x646   :  { %946 = vmatprep.subr.bf16.mxu0 %v1034_v33 }
 0x648   :  { %v529_v7 = vld [vmem:[#allocation4 + $0x18] sm:$0xff]  ;;  %v530_v8 = vld [vmem:[#allocation4 + $0x20] sm:$0xff] }
 0x649   :  { %947 = vmatpush3.bf16.msra.mxu0 %v528_v6 }
 0x64a   :  { %948 = vmatprep.subr.bf16.mxu0 %v1034_v33 }
 0x64c   :  { %v531_v9 = vld [vmem:[#allocation4 + $0x28] sm:$0xff]  ;;  %v532_v10 = vld [vmem:[#allocation4 + $0x30] sm:$0xff] }
 0x64d   :  { %949 = vmatpush3.bf16.msra.mxu0 %v529_v7 }
 0x64e   :  { %950 = vmatprep.subr.bf16.mxu0 %v1034_v33 }
 0x651   :  { %951 = vmatpush3.bf16.msra.mxu0 %v530_v8 }
 0x652   :  { %952 = vmatprep.subr.bf16.mxu0 %v1034_v33 }
 0x655   :  { %953 = vmatpush3.bf16.msra.mxu0 %v531_v9  ;;  %v538_v12 = vpop.permute.xlu0 %537  ;;  %v543_v14 = vpop.permute.xlu1 %542 }
 0x656   :  { %954 = vmatprep.subr.bf16.mxu0 %v1034_v33 }
 0x659   :  { %955 = vmatpush3.bf16.msra.mxu0 %v532_v10 }
 0x65c   :  { %957 = vmatmul.mubr.msk.bf16.vlgmr.msra.gmra.mrb[8].mxu0 %vm550_vm13, %v1024_v11 }
 0x72f   :  { %v588_v13 = vpop.f32.mrb[8].mxu0 }
 0x730   :  { %v589_v15 = vadd.f32 %v588_v13, %v538_v12  ;;  %v958_v16 = vpop.f32.mrb[9].mxu0 }
 0x731   :  { %v591_v17 = vpop.f32.mrb[10].mxu0 }
 0x732   :  { %v595_v18 = vmax.f32 %v589_v15, 0.0  ;;  %v592_v19 = vadd.f32 %v591_v17, %v543_v14  ;;  %v959_v20 = vpop.f32.mrb[11].mxu0 }
 0x734   :  { %v597_v23 = vmul.f32 %v1161_v40, %v595_v18  ;;  %v596_v24 = vmax.f32 %v592_v19, 0.0 }
 0x736   :  { %v598_v25 = vmul.f32 %v1161_v40, %v596_v24  ;;  %601 = vrot.lane.b32.xlu1 %v597_v23, %s1035_s15 }
 0x738   :  { %603 = vrot.lane.b32.xlu0 %v598_v25, %s1035_s15 }
 0x7a8   :  { %v602_v26 = vpop.permute.xlu1 %601 }
 0x7a9   :  { %607 = vst.msk [vmem:[#allocation3] sm:$0xff] %vm208_vm8, %v602_v26 }
 0x7aa   :  { %v604_v27 = vpop.permute.xlu0 %603 }
 0x7ab   :  { %608 = vst.msk [vmem:[#allocation3 + $0x8] sm:$0xff] %vm208_vm8, %v604_v27 }
 0x7b0   :  { %v619_v28 = vld [vmem:[#allocation3] sm:$0xff] }
 0x7b2   :  { %v620_v29 = vld [vmem:[#allocation3 + $0x8] sm:$0xff] }
 0x7b3   :  { %v621_v30 = vpack.c.bf16 %v620_v29, %v619_v28 }
 0x7b5   :  { %623 = vrot.lane.b32.xlu0 %v621_v30, %s1030_s0  ;;  %615 = vrot.lane.b32.xlu1 %v621_v30, %s1028_s24 }
 0x7b9   :  { %639 = vrot.lane.b32.xlu0 %v621_v30, %s1027_s23  ;;  %631 = vrot.lane.b32.xlu1 %v621_v30, %s1029_s25 }
 0x7bd   :  { %647 = vrot.lane.b32.xlu1 %v621_v30, %s1032_s29  ;;  %660 = vperm.xlu0 %1013, %v1135_v22  }
 0x7c1   :  { %665 = vperm.xlu1 %1014, %v1130_v21   ;;  %1015 = vset.pattern.permute.xlu0 %v1042_v57 }
 0x7c5   :  { %1016 = vset.pattern.permute.xlu1 %v1042_v57 }
 0x827   :  { %v624_v32 = vpop.permute.xlu0 %623  ;;  %v616_v34 = vpop.permute.xlu1 %615 }
 0x828   :  { %626 = vst.msk [vmem:[#allocation4 + $0x8] sm:$0xff] %vm238_vm10, %v624_v32  ;;  %618 = vst.msk [vmem:[#allocation4] sm:$0xff] %vm238_vm10, %v616_v34 }
 0x82b   :  { %v640_v35 = vpop.permute.xlu0 %639  ;;  %v632_v36 = vpop.permute.xlu1 %631 }
 0x82c   :  { %642 = vst.msk [vmem:[#allocation4 + $0x18] sm:$0xff] %vm238_vm10, %v640_v35  ;;  %634 = vst.msk [vmem:[#allocation4 + $0x10] sm:$0xff] %vm238_vm10, %v632_v36 }
 0x82f   :  { %v648_v37 = vpop.permute.xlu1 %647  ;;  %v651_v38 = vld [vmem:[#allocation4] sm:$0xff]  ;;  %v652_v39 = vld [vmem:[#allocation4 + $0x8] sm:$0xff] }
 0x830   :  { %650 = vst.msk [vmem:[#allocation4 + $0x20] sm:$0xff] %vm238_vm10, %v648_v37  ;;  %961 = vmatpush3.bf16.msra.mxu1 %v651_v38 }
 0x831   :  { %962 = vmatprep.subr.bf16.mxu1 %v1034_v33 }
 0x833   :  { %v653_v41 = vld [vmem:[#allocation4 + $0x10] sm:$0xff]  ;;  %v654_v42 = vld [vmem:[#allocation4 + $0x18] sm:$0xff] }
 0x834   :  { %963 = vmatpush3.bf16.msra.mxu1 %v652_v39 }
 0x835   :  { %964 = vmatprep.subr.bf16.mxu1 %v1034_v33 }
 0x837   :  { %v655_v43 = vld [vmem:[#allocation4 + $0x20] sm:$0xff] }
 0x838   :  { %965 = vmatpush3.bf16.msra.mxu1 %v653_v41 }
 0x839   :  { %966 = vmatprep.subr.bf16.mxu1 %v1034_v33 }
 0x83c   :  { %967 = vmatpush3.bf16.msra.mxu1 %v654_v42  ;;  %v661_v45 = vpop.permute.xlu0 %660 }
 0x83d   :  { %968 = vmatprep.subr.bf16.mxu1 %v1034_v33 }
 0x840   :  { %969 = vmatpush3.bf16.msra.mxu1 %v655_v43  ;;  %v666_v47 = vpop.permute.xlu1 %665 }
 0x841   :  { %974 = vmatprep.subr.bf16.mxu1 %v1034_v33 }
 0x843   :  { %971 = vmatmul.mubr.msk.bf16.vlgmr.msra.gmra.mrb[4].mxu1 %vm294_vm11, %v1025_v44 }
 0x844   :  { %980 = vmatprep.mubr.msk.bf16.mxu1 %vm1036_vm9, %v1034_v33 }
 0x916   :  { %v710_v46 = vpop.f32.mrb[4].mxu1 }
 0x917   :  { %v711_v48 = vadd.f32 %v710_v46, %v661_v45  ;;  %v972_v49 = vpop.f32.mrb[5].mxu1 }
 0x918   :  { %v713_v50 = vpop.f32.mrb[6].mxu1 }
 0x919   :  { %v717_v51 = vmax.f32 %v711_v48, 0.0  ;;  %v714_v52 = vadd.f32 %v713_v50, %v666_v47  ;;  %v973_v53 = vpop.f32.mrb[7].mxu1 }
 0x91b   :  { %v719_v54 = vmul.f32 %v1161_v40, %v717_v51  ;;  %v718_v55 = vmax.f32 %v714_v52, 0.0 }
 0x91d   :  { %v720_v56 = vmul.f32 %v1161_v40, %v718_v55  ;;  %723 = vrot.lane.b32.xlu1 %v719_v54, %s1035_s15  ;;  %v1043_v40 = vmov 8  }
 0x91f   :  { %725 = vrot.lane.b32.xlu0 %v720_v56, %s1035_s15 }
 0x98f   :  { %v724_v60 = vpop.permute.xlu1 %723 }
 0x990   :  { %729 = vst.msk [vmem:[#allocation3] sm:$0xff] %vm208_vm8, %v724_v60 }
 0x991   :  { %v726_v61 = vpop.permute.xlu0 %725 }
 0x992   :  { %730 = vst.msk [vmem:[#allocation3 + $0x8] sm:$0xff] %vm208_vm8, %v726_v61 }
 0x997   :  { %v741_v62 = vld [vmem:[#allocation3] sm:$0xff] }
 0x999   :  { %v742_v63 = vld [vmem:[#allocation3 + $0x8] sm:$0xff] }
 0x99a   :  { %v743_v0 = vpack.c.bf16 %v742_v63, %v741_v62 }
 0x99c   :  { %745 = vrot.lane.b32.xlu0 %v743_v0, %s1029_s25  ;;  %737 = vrot.lane.b32.xlu1 %v743_v0, %s1030_s0 }
 0x9a0   :  { %826 = vperm.xlu0 %1015, %v1135_v22   ;;  %753 = vrot.lane.b32.xlu1 %v743_v0, %s1027_s23 }
 0x9a4   :  { %830 = vperm.xlu1 %1016, %v1130_v21   ;;  %1018 = vset.pattern.permute.xlu0 %v1043_v40 }
 0x9a5   :  { %840 = vperm.xlu0 %1018, %v1130_v21  }
 0x9a8   :  { %1017 = vset.pattern.permute.xlu1 %v1043_v40 }
 0x9a9   :  { %836 = vperm.xlu1 %1017, %v1135_v22  }
 0x9ad   :  { %1019 = vset.pattern.permute.xlu1 %v1044_v1 }
 0x9ae   :  { %764 = vperm.xlu1 %1019, %v1135_v22  }
 0x9b2   :  { %769 = vperm.xlu1 %1019, %v1130_v21   ;;  %v1026_v21 = vld [vmem:[%s1338_s8] sm:$0xff]  }
 0xa0e   :  { %v746_v2 = vpop.permute.xlu0 %745  ;;  %v738_v3 = vpop.permute.xlu1 %737 }
 0xa0f   :  { %748 = vst.msk [vmem:[#allocation4 + $0x8] sm:$0xff] %vm238_vm10, %v746_v2  ;;  %740 = vst.msk [vmem:[#allocation4] sm:$0xff] %vm238_vm10, %v738_v3 }
 0xa12   :  { %v754_v4 = vpop.permute.xlu1 %753 }
 0xa13   :  { %756 = vst.msk [vmem:[#allocation4 + $0x10] sm:$0xff] %vm238_vm10, %v754_v4 }
 0xa16   :  { %v757_v5 = vld [vmem:[#allocation4] sm:$0xff]  ;;  %v758_v6 = vld [vmem:[#allocation4 + $0x8] sm:$0xff] }
 0xa17   :  { %975 = vmatpush3.bf16.msra.mxu1 %v757_v5 }
 0xa18   :  { %976 = vmatprep.subr.bf16.mxu1 %v1034_v33 }
 0xa1a   :  { %v759_v22 = vld [vmem:[#allocation4 + $0x10] sm:$0xff] }
 0xa1b   :  { %977 = vmatpush3.bf16.msra.mxu1 %v758_v6 }
 0xa1c   :  { %978 = vmatprep.subr.bf16.mxu1 %v1034_v33 }
 0xa1f   :  { %979 = vmatpush3.bf16.msra.mxu1 %v759_v22  ;;  %v827_v7 = vpop.permute.xlu0 %826 }
 0xa20   :  { %v833_v12 = vmul.f32 %v827_v7, %v1235_v58 }
 0xa22   :  { %981 = vmatmul.mubr.msk.bf16.vlgmr.msra.gmra.mrb[8].mxu1 %vm399_vm12, %v1026_v21 }
 0xa23   :  { %v831_v8 = vpop.permute.xlu1 %830 }
 0xa24   :  { %v834_v9 = vmul.f32 %v831_v8, %v1237_v59  ;;  %v841_v10 = vpop.permute.xlu0 %840 }
 0xa26   :  { %v844_v11 = vadd.f32 %v841_v10, %v834_v9 }
 0xa28   :  { %849 = vrot.lane.b32.xlu1 %v844_v11, %s1029_s25  ;;  %v837_v13 = vpop.permute.xlu1 %836 }
 0xa29   :  { %v843_v33 = vadd.f32 %v837_v13, %v833_v12 }
 0xa2b   :  { %847 = vrot.lane.b32.xlu0 %v843_v33, %s1029_s25 }
 0xa2d   :  { %v765_v14 = vpop.permute.xlu1 %764 }
 0xa31   :  { %v770_v15 = vpop.permute.xlu1 %769 }
 0xa9a   :  { %v850_v27 = vpop.permute.xlu1 %849 }
 0xa9d   :  { %v848_v59 = vpop.permute.xlu0 %847 }
 0xaf5   :  { %v814_v16 = vpop.f32.mrb[8].mxu1 }
 0xaf6   :  { %v815_v17 = vadd.f32 %v814_v16, %v765_v14  ;;  %v982_v18 = vpop.f32.mrb[9].mxu1 }
 0xaf7   :  { %v817_v19 = vpop.f32.mrb[10].mxu1 }
 0xaf8   :  { %v821_v20 = vmax.f32 %v815_v17, 0.0  ;;  %v818_v23 = vadd.f32 %v817_v19, %v770_v15  ;;  %v983_v24 = vpop.f32.mrb[11].mxu1 }
 0xafa   :  { %v853_v25 = vadd.f32 %v848_v59, %v821_v20  ;;  %v822_v26 = vmax.f32 %v818_v23, 0.0 }
 0xafc   :  { %v855_v58 = vmax.f32 %v853_v25, 0.0  ;;  %v854_v28 = vadd.f32 %v850_v27, %v822_v26 }
 0xafe   :  { %857 = vst.msk [vmem:[%s1339_s9] sm:$0xff] %vm238_vm10, %v855_v58  ;;  %v856_v29 = vmax.f32 %v854_v28, 0.0 }
 0xb00   :  { %858 = vst.msk [vmem:[%s1339_s9 + $0x8] sm:$0xff] %vm238_vm10, %v856_v29 }

</bundles_post_ra>
